<compile_context>
chip_gen: v7x
topology: tpu7x:2x2x1
jax: 0.10.0
libtpu: 0.0.40
codegen_flags: <defaults>
</compile_context>

<pallas_src>
import numpy as np

import jax
import jax.numpy as jnp
from jax.experimental import pallas as pl
from jax.experimental.pallas import tpu as pltpu

INIT_A = -0.1
INIT_B = 0.1
NUM_CLASSES = 41
LANE = 128


def _round_up(x, m):
    return (x + m - 1) // m * m


# --------------------------------------------------------------------------- #
# Kernel
# --------------------------------------------------------------------------- #
def _mlp_kernel(x_ref, w1_ref, b1_ref, w2_ref, b2_ref, w3_ref, b3_ref, o_ref):
    x = x_ref[...]
    if x.dtype != jnp.bfloat16:        # trace-time branch; no-op for bf16 inputs
        x = x.astype(jnp.bfloat16)
    # Layer 1: Linear(1024 -> 512) + ReLU. bf16 operands, f32 accumulation.
    h = jnp.dot(x, w1_ref[...], preferred_element_type=jnp.float32)
    h = jnp.maximum(h + b1_ref[...], 0.0)
    # Layer 2: Linear(512 -> 256) + ReLU.
    h = jnp.dot(h.astype(jnp.bfloat16), w2_ref[...],
                preferred_element_type=jnp.float32)
    h = jnp.maximum(h + b2_ref[...], 0.0)
    # Layer 3: Linear(256 -> 128-lane-padded head), no activation. Lane-dense store.
    h = jnp.dot(h.astype(jnp.bfloat16), w3_ref[...],
                preferred_element_type=jnp.float32)
    o_ref[...] = (h + b3_ref[...]).astype(o_ref.dtype)


# --------------------------------------------------------------------------- #
# One-time parameter preparation (hoisted out of the per-call forward path)
# --------------------------------------------------------------------------- #
def prepare_params(params):
    """Transpose PyTorch [out, in] weights to [in, out], cast to bf16, and
    lane-pad the 41-class head to 128 lanes. Call once at parameter-load time."""
    n_cls = params["w3"].shape[0]                         # 41
    n_pad = _round_up(n_cls, LANE)                        # 128
    w3t = jnp.zeros((params["w3"].shape[1], n_pad), jnp.bfloat16)
    w3t = w3t.at[:, :n_cls].set(params["w3"].T.astype(jnp.bfloat16))
    b3 = jnp.zeros((1, n_pad), jnp.float32)
    b3 = b3.at[:, :n_cls].set(params["b3"].astype(jnp.float32))
    return {
        "w1t": params["w1"].T.astype(jnp.bfloat16),       # [1024, 512]
        "b1": params["b1"].reshape(1, -1).astype(jnp.float32),
        "w2t": params["w2"].T.astype(jnp.bfloat16),       # [512, 256]
        "b2": params["b2"].reshape(1, -1).astype(jnp.float32),
        "w3t": w3t,                                       # [256, 128] lane-padded
        "b3": b3,                                         # [1, 128] lane-padded
    }


# --------------------------------------------------------------------------- #
# Tiling policy (generation-aware)
# --------------------------------------------------------------------------- #
def _num_tensorcores_per_device():
    """v4 / v5p (megacore) and v7x expose 2 TensorCores per device; v5e/v6e 1."""
    try:
        kind = jax.devices()[0].device_kind.lower()
    except Exception:
        return 1
    return 2 if any(tag in kind for tag in ("v4", "v5p", "v7")) else 1


def _pick_batch_tile(batch, n_cores, cap=1024):
    """Rows per grid step. Single-TC chips: one big step up to `cap` rows (grid
    is a serial loop there; fewer steps = less fixed overhead, longer DMA
    bursts). 2-TC chips: an even number of balanced steps so 'parallel'
    megacore sharding keeps both cores busy. `cap`=1024 keeps VMEM ~12 MiB."""
    b8 = _round_up(batch, 8)
    if n_cores <= 1:
        steps = pl.cdiv(b8, cap)
    else:
        steps = max(2, 2 * pl.cdiv(b8, 2 * cap))
    return _round_up(pl.cdiv(b8, steps), 8)


# --------------------------------------------------------------------------- #
# Forward wrapper
# --------------------------------------------------------------------------- #
def tactic_classifier_forward(x, prep, *, num_classes=NUM_CLASSES, tb=None,
                              out_dtype=jnp.bfloat16):
    """x: [B, input_size]; bf16 preferred (halves the dominant HBM stream), f32
    accepted. prep: output of prepare_params(). Returns [B, num_classes]."""
    B, D_in = x.shape
    H0 = prep["w1t"].shape[1]
    H1 = prep["w2t"].shape[1]
    H2 = prep["w3t"].shape[1]                  # lane-padded head width (128)

    if tb is None:
        tb = _pick_batch_tile(B, _num_tensorcores_per_device())
    tb = max(8, _round_up(tb, 8))
    grid = (pl.cdiv(B, tb),)                   # ragged last block: no jnp.pad copy

    flops = 2 * B * (D_in * H0 + H0 * H1 + H1 * H2)
    bytes_accessed = int(
        2 * (prep["w1t"].size + prep["w2t"].size + prep["w3t"].size)   # bf16 weights
        + 4 * (prep["b1"].size + prep["b2"].size + prep["b3"].size)    # f32 biases
        + x.dtype.itemsize * x.size                                    # activations in
        + np.dtype(out_dtype).itemsize * B * H2                        # activations out
    )
    cost = pl.CostEstimate(flops=flops, transcendentals=0,
                           bytes_accessed=bytes_accessed)

    out = pl.pallas_call(
        _mlp_kernel,
        out_shape=jax.ShapeDtypeStruct((B, H2), out_dtype),
        grid_spec=pltpu.PrefetchScalarGridSpec(
            num_scalar_prefetch=0,
            grid=grid,
            in_specs=[
                pl.BlockSpec((tb, D_in), lambda i: (i, 0)),   # x tile (streamed)
                pl.BlockSpec((D_in, H0), lambda i: (0, 0)),   # W1^T (resident)
                pl.BlockSpec((1, H0), lambda i: (0, 0)),      # b1
                pl.BlockSpec((H0, H1), lambda i: (0, 0)),     # W2^T
                pl.BlockSpec((1, H1), lambda i: (0, 0)),      # b2
                pl.BlockSpec((H1, H2), lambda i: (0, 0)),     # W3^T (lane-padded)
                pl.BlockSpec((1, H2), lambda i: (0, 0)),      # b3 (lane-padded)
            ],
            out_specs=pl.BlockSpec((tb, H2), lambda i: (i, 0)),
        ),
        compiler_params=pltpu.CompilerParams(
            dimension_semantics=("parallel",)),
        cost_estimate=cost,
    )(x, prep["w1t"], prep["b1"], prep["w2t"], prep["b2"], prep["w3t"], prep["b3"])

    # Strip the lane padding of the head; keep bf16 (halved writeback / copy).
    return out[:, :num_classes]


# --------------------------------------------------------------------------- #
# Init + pure-JAX reference
# --------------------------------------------------------------------------- #
def init_params(key, input_size=1024, hidden_layers=(512, 256, 41)):
    """Deterministic Uniform(init_a, init_b) init, matching the PyTorch module."""
    h0, h1, h2 = hidden_layers
    ks = jax.random.split(key, 6)
    uni = lambda k, shape: jax.random.uniform(
        k, shape, dtype=jnp.float32, minval=INIT_A, maxval=INIT_B)
    return {
        "w1": uni(ks[0], (h0, input_size)),   # PyTorch Linear weight [out, in]
        "b1": uni(ks[1], (h0,)),
        "w2": uni(ks[2], (h1, h0)),
        "b2": uni(ks[3], (h1,)),
        "w3": uni(ks[4], (h2, h1)),
        "b3": uni(ks[5], (h2,)),
    }


def _reference_forward(x, params):
    # Pure-JAX f32 reference (dropout in eval mode = identity).
    h = jnp.maximum(x @ params["w1"].T + params["b1"], 0.0)
    h = jnp.maximum(h @ params["w2"].T + params["b2"], 0.0)
    return h @ params["w3"].T + params["b3"]


if __name__ == "__main__":
    key = jax.random.PRNGKey(0)
    k_param, k_x = jax.random.split(key)

    INPUT_SIZE = 1024
    HIDDEN = (512, 256, 41)
    BATCH = 12  # deliberately not a multiple of 8: exercises the ragged-block path

    params = init_params(k_param, INPUT_SIZE, HIDDEN)
    prep = prepare_params(params)   # one-time weight prep, hoisted out of forward

    # Upstream producer emits bf16 activations (bandwidth-bound v6e/v7x).
    x = jax.random.normal(k_x, (BATCH, INPUT_SIZE), dtype=jnp.float32)
    x = x.astype(jnp.bfloat16)

    fwd = jax.jit(tactic_classifier_forward)
    out = jax.block_until_ready(fwd(x, prep))

    assert out.shape == (BATCH, HIDDEN[-1]), out.shape

    # Reference in f32 on the same (bf16-valued) inputs; error budget scaled to
    # output magnitude (bf16 matmul operands + bf16 output quantization).
    ref = _reference_forward(x.astype(jnp.float32), params)
    scale = float(jnp.maximum(jnp.max(jnp.abs(ref)), 1.0))
    max_err = float(jnp.max(jnp.abs(out.astype(jnp.float32) - ref)))
    assert max_err <= 0.03 * scale, (
        "mismatch vs reference: max abs err %g (scale %g)" % (max_err, scale))

    print("KERNEL_OK")
</pallas_src>

<mosaic_0001>
module attributes {stable_mosaic.version = 11 : i64} {
  func.func @_mlp_kernel(%arg0: i32, %arg1: memref<16x1024xbf16, #tpu.memory_space<vmem>>, %arg2: memref<1024x512xbf16, #tpu.memory_space<vmem>>, %arg3: memref<1x512xf32, #tpu.memory_space<vmem>>, %arg4: memref<512x256xbf16, #tpu.memory_space<vmem>>, %arg5: memref<1x256xf32, #tpu.memory_space<vmem>>, %arg6: memref<256x128xbf16, #tpu.memory_space<vmem>>, %arg7: memref<1x128xf32, #tpu.memory_space<vmem>>, %arg8: memref<16x128xbf16, #tpu.memory_space<vmem>>) attributes {dimension_semantics = [#tpu.dimension_semantics<parallel>], iteration_bounds = array<i64: 1>, scalar_prefetch = 0 : i64, scratch_operands = 0 : i64, tpu.core_type = #tpu.core_type<tc>, window_params = [{transform_indices = @transform_0, window_bounds = array<i64: 16, 1024>}, {pipeline_mode = #tpu.pipeline_mode<synchronous>, transform_indices = @transform_1, window_bounds = array<i64: 1024, 512>}, {pipeline_mode = #tpu.pipeline_mode<synchronous>, transform_indices = @transform_2, window_bounds = array<i64: 1, 512>}, {pipeline_mode = #tpu.pipeline_mode<synchronous>, transform_indices = @transform_3, window_bounds = array<i64: 512, 256>}, {pipeline_mode = #tpu.pipeline_mode<synchronous>, transform_indices = @transform_4, window_bounds = array<i64: 1, 256>}, {pipeline_mode = #tpu.pipeline_mode<synchronous>, transform_indices = @transform_5, window_bounds = array<i64: 256, 128>}, {pipeline_mode = #tpu.pipeline_mode<synchronous>, transform_indices = @transform_6, window_bounds = array<i64: 1, 128>}, {transform_indices = @transform_7, window_bounds = array<i64: 16, 128>}]} {
    %c0 = arith.constant 0 : index
    %c0_0 = arith.constant 0 : index
    %0 = vector.load %arg1[%c0, %c0_0] : memref<16x1024xbf16, #tpu.memory_space<vmem>>, vector<16x1024xbf16>
    %c0_1 = arith.constant 0 : index
    %c0_2 = arith.constant 0 : index
    %1 = vector.load %arg2[%c0_1, %c0_2] : memref<1024x512xbf16, #tpu.memory_space<vmem>>, vector<1024x512xbf16>
    %cst = arith.constant dense<0.000000e+00> : vector<16x512xf32>
    %2 = tpu.matmul %0, %1, %cst {dimension_numbers = #tpu.dot_dimension_numbers<[1], [0], [0], [1], [0, 0, 1, 1], [], []>} : vector<16x1024xbf16>, vector<1024x512xbf16>, vector<16x512xf32> -> vector<16x512xf32>
    %c0_3 = arith.constant 0 : index
    %c0_4 = arith.constant 0 : index
    %3 = vector.load %arg3[%c0_3, %c0_4] : memref<1x512xf32, #tpu.memory_space<vmem>>, vector<1x512xf32>
    %4 = vector.broadcast %3 : vector<1x512xf32> to vector<16x512xf32>
    %5 = arith.addf %2, %4 : vector<16x512xf32>
    %cst_5 = arith.constant 0.000000e+00 : f32
    %6 = vector.broadcast %cst_5 : f32 to vector<16x512xf32>
    %7 = arith.maximumf %5, %6 : vector<16x512xf32>
    %8 = arith.truncf %7 : vector<16x512xf32> to vector<16x512xbf16>
    %c0_6 = arith.constant 0 : index
    %c0_7 = arith.constant 0 : index
    %9 = vector.load %arg4[%c0_6, %c0_7] : memref<512x256xbf16, #tpu.memory_space<vmem>>, vector<512x256xbf16>
    %cst_8 = arith.constant dense<0.000000e+00> : vector<16x256xf32>
    %10 = tpu.matmul %8, %9, %cst_8 {dimension_numbers = #tpu.dot_dimension_numbers<[1], [0], [0], [1], [0, 0, 1, 1], [], []>} : vector<16x512xbf16>, vector<512x256xbf16>, vector<16x256xf32> -> vector<16x256xf32>
    %c0_9 = arith.constant 0 : index
    %c0_10 = arith.constant 0 : index
    %11 = vector.load %arg5[%c0_9, %c0_10] : memref<1x256xf32, #tpu.memory_space<vmem>>, vector<1x256xf32>
    %12 = vector.broadcast %11 : vector<1x256xf32> to vector<16x256xf32>
    %13 = arith.addf %10, %12 : vector<16x256xf32>
    %cst_11 = arith.constant 0.000000e+00 : f32
    %14 = vector.broadcast %cst_11 : f32 to vector<16x256xf32>
    %15 = arith.maximumf %13, %14 : vector<16x256xf32>
    %16 = arith.truncf %15 : vector<16x256xf32> to vector<16x256xbf16>
    %c0_12 = arith.constant 0 : index
    %c0_13 = arith.constant 0 : index
    %17 = vector.load %arg6[%c0_12, %c0_13] : memref<256x128xbf16, #tpu.memory_space<vmem>>, vector<256x128xbf16>
    %cst_14 = arith.constant dense<0.000000e+00> : vector<16x128xf32>
    %18 = tpu.matmul %16, %17, %cst_14 {dimension_numbers = #tpu.dot_dimension_numbers<[1], [0], [0], [1], [0, 0, 1, 1], [], []>} : vector<16x256xbf16>, vector<256x128xbf16>, vector<16x128xf32> -> vector<16x128xf32>
    %c0_15 = arith.constant 0 : index
    %c0_16 = arith.constant 0 : index
    %19 = vector.load %arg7[%c0_15, %c0_16] : memref<1x128xf32, #tpu.memory_space<vmem>>, vector<1x128xf32>
    %20 = vector.broadcast %19 : vector<1x128xf32> to vector<16x128xf32>
    %21 = arith.addf %18, %20 : vector<16x128xf32>
    %22 = arith.truncf %21 : vector<16x128xf32> to vector<16x128xbf16>
    %c0_17 = arith.constant 0 : index
    %c0_18 = arith.constant 0 : index
    %23 = vector.load %arg8[%c0_17, %c0_18] : memref<16x128xbf16, #tpu.memory_space<vmem>>, vector<16x128xbf16>
    tpu.vector_store %arg8[%c0_17, %c0_18], %22 {strides = array<i32>} : memref<16x128xbf16, #tpu.memory_space<vmem>>, vector<16x128xbf16>,
    return
  }
  func.func @transform_0(%arg0: i32) -> (i32, i32) {
    %c0_i32 = arith.constant 0 : i32
    %c0_i32_0 = arith.constant 0 : i32
    return %arg0, %c0_i32 : i32, i32
  }
  func.func @transform_1(%arg0: i32) -> (i32, i32) {
    %c0_i32 = arith.constant 0 : i32
    %c0_i32_0 = arith.constant 0 : i32
    %c0_i32_1 = arith.constant 0 : i32
    return %c0_i32, %c0_i32_0 : i32, i32
  }
  func.func @transform_2(%arg0: i32) -> (i32, i32) {
    %c0_i32 = arith.constant 0 : i32
    %c0_i32_0 = arith.constant 0 : i32
    %c0_i32_1 = arith.constant 0 : i32
    return %c0_i32, %c0_i32_0 : i32, i32
  }
  func.func @transform_3(%arg0: i32) -> (i32, i32) {
    %c0_i32 = arith.constant 0 : i32
    %c0_i32_0 = arith.constant 0 : i32
    %c0_i32_1 = arith.constant 0 : i32
    return %c0_i32, %c0_i32_0 : i32, i32
  }
  func.func @transform_4(%arg0: i32) -> (i32, i32) {
    %c0_i32 = arith.constant 0 : i32
    %c0_i32_0 = arith.constant 0 : i32
    %c0_i32_1 = arith.constant 0 : i32
    return %c0_i32, %c0_i32_0 : i32, i32
  }
  func.func @transform_5(%arg0: i32) -> (i32, i32) {
    %c0_i32 = arith.constant 0 : i32
    %c0_i32_0 = arith.constant 0 : i32
    %c0_i32_1 = arith.constant 0 : i32
    return %c0_i32, %c0_i32_0 : i32, i32
  }
  func.func @transform_6(%arg0: i32) -> (i32, i32) {
    %c0_i32 = arith.constant 0 : i32
    %c0_i32_0 = arith.constant 0 : i32
    %c0_i32_1 = arith.constant 0 : i32
    return %c0_i32, %c0_i32_0 : i32, i32
  }
  func.func @transform_7(%arg0: i32) -> (i32, i32) {
    %c0_i32 = arith.constant 0 : i32
    %c0_i32_0 = arith.constant 0 : i32
    return %arg0, %c0_i32 : i32, i32
  }
}

</mosaic_0001>

<bundles_post_ra>
// kernel: tactic_classifier_forward.1
= control target key start
LH: loop header
LB: loop body
LE: loop exit
PB: predicated region body
PF: predicated region fallthrough
CT: control target
= control target key end

     0   :  { %12 = vsyncpa [#allocation3], 0  ;;  %s4017_s0 = inlined_call_operand.hbm [shape: bf16[12,1024], index: 0, kind: input, shape index: {}]   ;;  %s4018_s1 = inlined_call_operand.hbm [shape: bf16[1024,512], index: 1, kind: input, shape index: {}]   ;;  %s4019_s2 = inlined_call_operand.hbm [shape: f32[1,512], index: 2, kind: input, shape index: {}]   ;;  %s4020_s3 = inlined_call_operand.hbm [shape: bf16[512,256], index: 3, kind: input, shape index: {}]   ;;  %s4021_s4 = inlined_call_operand.vmem [shape: f32[1,256], index: 4, kind: input, shape index: {}]   ;;  %s4022_s5 = inlined_call_operand.hbm [shape: bf16[256,128], index: 5, kind: input, shape index: {}]   ;;  %s4023_s6 = inlined_call_operand.vmem [shape: f32[1,128], index: 6, kind: input, shape index: {}]   ;;  %s4024_s7 = inlined_call_operand.hbm [shape: bf16[12,128], index: 7, kind: output, shape index: {}]  }
   0x1   :  { %13 = vsyncpa [#allocation6], 0 }
   0x2   :  { %14 = vsyncpa [#allocation9], 0 }
   0x3   :  { %15 = vsyncpa [#allocation4], 0  ;;  %s3815_s24 = smov [#allocation5]   ;;  %s3675_s28 = scalar_lea.hbm %s4018_s1, 32768 }
   0x4   :  { %s33_s25 = sshll.u32 %s3815_s24, 4  ;;  %p3676_p0 = scmp.ne.s32.totalorder %s4018_s1, %s3675_s28  ;;  %s34_s25 = int_to_ptr.vmem [resolvable:$true] %s33_s25 }
   0x5   :  { %p3679_p1 = scmp.lt.u32.totalorder %s3675_s28, %s4018_s1 }
   0x7   :  { %p3681_p2 = pnand %p3679_p1, %p3676_p0 }
   0x9   :  { %3684 = shalt.err (!%p3681_p2)
}
   0xa   :  { %s3685_s10 = scalar_lea.vmem %s34_s25, 32768  ;;  %p3690_p4 = scmp.lt.s32.totalorder %s34_s25, %s34_s25 }
   0xb   :  { %p3686_p3 = scmp.ne.s32.totalorder %s34_s25, %s3685_s10  ;;  %p3691_p5 = scmp.lt.s32.totalorder %s3685_s10, %s3685_s10 }
   0xd   :  { %p3692_p6 = por %p3691_p5, %p3690_p4 }
   0xf   :  { %p3693_p7 = pnand %p3692_p6, %p3686_p3 }
  0x11   :  { %3696 = shalt.err (!%p3693_p7)
}
  0x12   :  { %s3816_s11 = smov 256   ;;  %s3817_s12 = smov 16  }
  0x13   :  { %39 = dma.hbm_to_vmem [thread:$0]  %s4018_s1, 32768, %s34_s25, [#allocation6], %s3816_s11, %s3816_s11, %s3817_s12  }
  0x14   :  { %s3818_s15 = smov [#allocation8]   ;;  %s3697_s19 = scalar_lea.hbm %s4020_s3, 8192 }
  0x15   :  { %s55_s16 = sshll.u32 %s3818_s15, 4  ;;  %p3698_p8 = scmp.ne.s32.totalorder %s4020_s3, %s3697_s19  ;;  %s56_s16 = int_to_ptr.vmem [resolvable:$true] %s55_s16 }
  0x16   :  { %p3701_p9 = scmp.lt.u32.totalorder %s3697_s19, %s4020_s3 }
  0x18   :  { %p3703_p10 = pnand %p3701_p9, %p3698_p8 }
  0x1a   :  { %3706 = shalt.err (!%p3703_p10)
}
  0x1b   :  { %s3707_s24 = scalar_lea.vmem %s56_s16, 8192  ;;  %p3712_p12 = scmp.lt.s32.totalorder %s56_s16, %s56_s16 }
  0x1c   :  { %p3708_p11 = scmp.ne.s32.totalorder %s56_s16, %s3707_s24  ;;  %p3713_p13 = scmp.lt.s32.totalorder %s3707_s24, %s3707_s24 }
  0x1e   :  { %p3714_p0 = por %p3713_p13, %p3712_p12 }
  0x20   :  { %p3715_p1 = pnand %p3714_p0, %p3708_p11 }
  0x22   :  { %3718 = shalt.err (!%p3715_p1)
}
  0x23   :  { %s3819_s1 = smov 128   ;;  %s3820_s25 = smov 8  }
  0x24   :  { %61 = dma.hbm_to_vmem [thread:$0]  %s4020_s3, 8192, %s56_s16, [#allocation9], %s3819_s1, %s3819_s1, %s3820_s25  }
  0x25   :  { %s3821_s28 = smov [#allocation2]   ;;  %s3719_s9 = scalar_lea.hbm %s4017_s0, 1024 }
  0x26   :  { %s21_s29 = sshll.u32 %s3821_s28, 4  ;;  %p3720_p2 = scmp.ne.s32.totalorder %s4017_s0, %s3719_s9  ;;  %s22_s29 = int_to_ptr.vmem [resolvable:$true] %s21_s29 }
  0x27   :  { %p3723_p3 = scmp.lt.u32.totalorder %s3719_s9, %s4017_s0 }
  0x29   :  { %p3725_p4 = pnand %p3723_p3, %p3720_p2 }
  0x2b   :  { %3728 = shalt.err (!%p3725_p4)
}
  0x2c   :  { %s3729_s14 = scalar_lea.vmem %s22_s29, 1024  ;;  %p3734_p6 = scmp.lt.s32.totalorder %s22_s29, %s22_s29 }
  0x2d   :  { %p3730_p5 = scmp.ne.s32.totalorder %s22_s29, %s3729_s14  ;;  %p3735_p7 = scmp.lt.s32.totalorder %s3729_s14, %s3729_s14 }
  0x2f   :  { %p3736_p8 = por %p3735_p7, %p3734_p6 }
  0x31   :  { %p3737_p9 = pnand %p3736_p8, %p3730_p5 }
  0x33   :  { %3740 = shalt.err (!%p3737_p9)
}
  0x34   :  { %s3822_s3 = smov 512   ;;  %s3823_s15 = smov 32  }
  0x35   :  { %27 = dma.hbm_to_vmem [thread:$0]  %s4017_s0, 1024, %s22_s29, [#allocation3], %s3822_s3, %s3822_s3, %s3823_s15  }
  0x36   :  { %s3824_s18 = smov [#allocation7]   ;;  %s3825_s20 = smov [#allocation10]  }
  0x37   :  { %s46_s19 = sshll.u32 %s3824_s18, 4  ;;  %s69_s21 = sshll.u32 %s3825_s20, 4  ;;  %s47_s19 = int_to_ptr.vmem [resolvable:$true] %s46_s19  ;;  %s70_s21 = int_to_ptr.vmem [resolvable:$true] %s69_s21 }
  0x38   :  { %s3741_s24 = scalar_lea.hbm %s4019_s2, 64 }
  0x39   :  { %p3742_p10 = scmp.ne.s32.totalorder %s4019_s2, %s3741_s24  ;;  %p3745_p11 = scmp.lt.u32.totalorder %s3741_s24, %s4019_s2 }
  0x3b   :  { %p3747_p12 = pnand %p3745_p11, %p3742_p10 }
  0x3d   :  { %3750 = shalt.err (!%p3747_p12)
}
  0x3e   :  { %s3751_s0 = scalar_lea.vmem %s47_s19, 64  ;;  %p3756_p0 = scmp.lt.s32.totalorder %s47_s19, %s47_s19 }
  0x3f   :  { %p3752_p13 = scmp.ne.s32.totalorder %s47_s19, %s3751_s0  ;;  %p3757_p1 = scmp.lt.s32.totalorder %s3751_s0, %s3751_s0 }
  0x41   :  { %p3758_p2 = por %p3757_p1, %p3756_p0 }
  0x43   :  { %p3759_p3 = pnand %p3758_p2, %p3752_p13 }
  0x45   :  { %3762 = shalt.err (!%p3759_p3)
}
  0x46   :  { %49 = dma.hbm_to_vmem [thread:$0]  %s4019_s2, 64, %s47_s19, [#allocation6]  }
  0x47   :  { %s3763_s9 = scalar_lea.hbm %s4022_s5, 2048 }
  0x48   :  { %p3764_p4 = scmp.ne.s32.totalorder %s4022_s5, %s3763_s9  ;;  %p3767_p5 = scmp.lt.u32.totalorder %s3763_s9, %s4022_s5 }
  0x4a   :  { %p3769_p6 = pnand %p3767_p5, %p3764_p4 }
  0x4c   :  { %3772 = shalt.err (!%p3769_p6)
}
  0x4d   :  { %s3773_s14 = scalar_lea.vmem %s70_s21, 2048  ;;  %p3778_p8 = scmp.lt.s32.totalorder %s70_s21, %s70_s21 }
  0x4e   :  { %p3774_p7 = scmp.ne.s32.totalorder %s70_s21, %s3773_s14  ;;  %p3779_p9 = scmp.lt.s32.totalorder %s3773_s14, %s3773_s14 }
  0x50   :  { %p3780_p10 = por %p3779_p9, %p3778_p8 }
  0x52   :  { %p3781_p11 = pnand %p3780_p10, %p3774_p7 }
  0x54   :  { %3784 = shalt.err (!%p3781_p11)
}
  0x55   :  { %s3826_s2 = smov 64   ;;  %s3827_s3 = smov 4  }
  0x56   :  { %75 = dma.hbm_to_vmem [thread:$0]  %s4022_s5, 2048, %s70_s21, [#allocation9], %s3826_s2, %s3826_s2, %s3827_s3  }
  0x57   :  { %3807 = dma.done.wait [#allocation3], 1024  }
  0x58   :  { %3808 = vsyncadd [#allocation3], 4294966272 }
  0x59   :  { %3809 = dma.done.wait [#allocation6], 32832  }
  0x5a   :  { %3810 = vsyncadd [#allocation6], 4294934464 }
  0x5b   :  { %3811 = dma.done.wait [#allocation9], 10240  }
  0x5c   :  { %3812 = vsyncadd [#allocation9], 4294957056  ;;  %v3179_v0 = vld [vmem:[#allocation5 + $0x4] ss:$16 sps:$4 sm:$0xff]   ;;  %v3183_v2 = vld [vmem:[#allocation5] ss:$16 sps:$4 sm:$0xff]  }
  0x5d   :  { %v3181_v1 = vld [vmem:[#allocation5 + $0x204] ss:$16 sps:$4 sm:$0xff]   ;;  %1700 = vmatprep.subr.bf16.mxu1 %v3179_v0  ;;  %v3184_v3 = vld [vmem:[#allocation5 + $0x200] ss:$16 sps:$4 sm:$0xff]   ;;  %v95_v50 = vld [vmem:[#allocation2 + $0x8] sm:$0xff]  ;;  %s3828_s19 = smov [#allocation11]  }
  0x5e   :  { %1743 = vmatprep.subr.bf16.mxu0 %v3181_v1  ;;  %v3185_v4 = vld [vmem:[#allocation5 + $0x24] ss:$16 sps:$4 sm:$0xff]   ;;  %1701 = vmatpush1.bf16.msra.mxu1 %v3183_v2  ;;  %v3189_v6 = vld [vmem:[#allocation5 + $0x20] ss:$16 sps:$4 sm:$0xff]   ;;  %v99_v51 = vld [vmem:[#allocation2 + $0x28] sm:$0xff]  ;;  %s2735_s20 = sshll.u32 %s3828_s19, 4  ;;  %s2736_s20 = int_to_ptr.vmem [resolvable:$true] %s2735_s20 }
  0x5f   :  { %1744 = vmatpush1.bf16.msra.mxu0 %v3184_v3  ;;  %v3187_v5 = vld [vmem:[#allocation5 + $0x224] ss:$16 sps:$4 sm:$0xff]   ;;  %1702 = vmatprep.subr.bf16.mxu1 %v3185_v4  ;;  %v3190_v7 = vld [vmem:[#allocation5 + $0x220] ss:$16 sps:$4 sm:$0xff]   ;;  %v3932_v55 = vcombine.high %v95_v50, %v99_v51  ;;  %s3785_s21 = scalar_lea.vmem %s2736_s20, 128  ;;  %p3790_p13 = scmp.lt.s32.totalorder %s2736_s20, %s2736_s20 }
  0x60   :  { %1745 = vmatprep.subr.bf16.mxu0 %v3187_v5  ;;  %v3191_v8 = vld [vmem:[#allocation5 + $0x44] ss:$16 sps:$4 sm:$0xff]   ;;  %v3195_v10 = vld [vmem:[#allocation5 + $0x40] ss:$16 sps:$4 sm:$0xff]   ;;  %p3786_p12 = scmp.ne.s32.totalorder %s2736_s20, %s3785_s21  ;;  %p3791_p0 = scmp.lt.s32.totalorder %s3785_s21, %s3785_s21 }
  0x61   :  { %v3193_v9 = vld [vmem:[#allocation5 + $0x244] ss:$16 sps:$4 sm:$0xff]   ;;  %v3196_v11 = vld [vmem:[#allocation5 + $0x240] ss:$16 sps:$4 sm:$0xff]   ;;  %1775 = vmatprep.mubr.bf16.mxu0 %v3932_v55 }
  0x62   :  { %1703 = vmatpush1.bf16.msra.mxu1 %v3189_v6  ;;  %v3197_v12 = vld [vmem:[#allocation5 + $0x64] ss:$16 sps:$4 sm:$0xff]   ;;  %v3201_v14 = vld [vmem:[#allocation5 + $0x60] ss:$16 sps:$4 sm:$0xff]   ;;  %p3792_p1 = por %p3791_p0, %p3790_p13 }
  0x63   :  { %1746 = vmatpush1.bf16.msra.mxu0 %v3190_v7  ;;  %1704 = vmatprep.subr.bf16.mxu1 %v3191_v8  ;;  %v3199_v13 = vld [vmem:[#allocation5 + $0x264] ss:$16 sps:$4 sm:$0xff]   ;;  %v3202_v15 = vld [vmem:[#allocation5 + $0x260] ss:$16 sps:$4 sm:$0xff]   ;;  %v3280_v7 = vld [vmem:[#allocation5 + $0xc] ss:$16 sps:$4 sm:$0xff]  }
  0x64   :  { %1747 = vmatprep.subr.bf16.mxu0 %v3193_v9  ;;  %v3203_v16 = vld [vmem:[#allocation5 + $0x84] ss:$16 sps:$4 sm:$0xff]   ;;  %v3207_v18 = vld [vmem:[#allocation5 + $0x80] ss:$16 sps:$4 sm:$0xff]   ;;  %v3937_v9 = vcombine.low %v95_v50, %v99_v51  ;;  %v3332_v50 = vld [vmem:[#allocation5 + $0x128] ss:$16 sps:$4 sm:$0xff]   ;;  %p3793_p2 = pnand %p3792_p1, %p3786_p12 }
  0x65   :  { %v3205_v17 = vld [vmem:[#allocation5 + $0x284] ss:$16 sps:$4 sm:$0xff]   ;;  %v3208_v19 = vld [vmem:[#allocation5 + $0x280] ss:$16 sps:$4 sm:$0xff]  }
  0x66   :  { %1705 = vmatpush1.bf16.msra.mxu1 %v3195_v10  ;;  %v3209_v20 = vld [vmem:[#allocation5 + $0xa4] ss:$16 sps:$4 sm:$0xff]   ;;  %v3213_v22 = vld [vmem:[#allocation5 + $0xa0] ss:$16 sps:$4 sm:$0xff]  }
  0x67   :  { %1748 = vmatpush1.bf16.msra.mxu0 %v3196_v11  ;;  %1706 = vmatprep.subr.bf16.mxu1 %v3197_v12  ;;  %v3211_v21 = vld [vmem:[#allocation5 + $0x2a4] ss:$16 sps:$4 sm:$0xff]   ;;  %v3214_v23 = vld [vmem:[#allocation5 + $0x2a0] ss:$16 sps:$4 sm:$0xff]   ;;  %v3278_v11 = vld [vmem:[#allocation5 + $0x8] ss:$16 sps:$4 sm:$0xff]  }
  0x68   :  { %1749 = vmatprep.subr.bf16.mxu0 %v3199_v13  ;;  %v3215_v24 = vld [vmem:[#allocation5 + $0xc4] ss:$16 sps:$4 sm:$0xff]   ;;  %v3219_v26 = vld [vmem:[#allocation5 + $0xc0] ss:$16 sps:$4 sm:$0xff]   ;;  %v3286_v13 = vld [vmem:[#allocation5 + $0x2c] ss:$16 sps:$4 sm:$0xff]  }
  0x69   :  { %v3217_v25 = vld [vmem:[#allocation5 + $0x2c4] ss:$16 sps:$4 sm:$0xff]   ;;  %v3220_v27 = vld [vmem:[#allocation5 + $0x2c0] ss:$16 sps:$4 sm:$0xff]  }
  0x6a   :  { %1707 = vmatpush1.bf16.msra.mxu1 %v3201_v14  ;;  %v3221_v28 = vld [vmem:[#allocation5 + $0xe4] ss:$16 sps:$4 sm:$0xff]   ;;  %v3225_v30 = vld [vmem:[#allocation5 + $0xe0] ss:$16 sps:$4 sm:$0xff]  }
  0x6b   :  { %1750 = vmatpush1.bf16.msra.mxu0 %v3202_v15  ;;  %1708 = vmatprep.subr.bf16.mxu1 %v3203_v16  ;;  %v3223_v29 = vld [vmem:[#allocation5 + $0x2e4] ss:$16 sps:$4 sm:$0xff]   ;;  %v3226_v31 = vld [vmem:[#allocation5 + $0x2e0] ss:$16 sps:$4 sm:$0xff]   ;;  %v3284_v15 = vld [vmem:[#allocation5 + $0x28] ss:$16 sps:$4 sm:$0xff]  }
  0x6c   :  { %1751 = vmatprep.subr.bf16.mxu0 %v3205_v17  ;;  %v3227_v32 = vld [vmem:[#allocation5 + $0x104] ss:$16 sps:$4 sm:$0xff]   ;;  %v3231_v34 = vld [vmem:[#allocation5 + $0x100] ss:$16 sps:$4 sm:$0xff]   ;;  %v3292_v17 = vld [vmem:[#allocation5 + $0x4c] ss:$16 sps:$4 sm:$0xff]  }
  0x6d   :  { %v3229_v33 = vld [vmem:[#allocation5 + $0x304] ss:$16 sps:$4 sm:$0xff]   ;;  %v3232_v35 = vld [vmem:[#allocation5 + $0x300] ss:$16 sps:$4 sm:$0xff]  }
  0x6e   :  { %1709 = vmatpush1.bf16.msra.mxu1 %v3207_v18  ;;  %v3233_v36 = vld [vmem:[#allocation5 + $0x124] ss:$16 sps:$4 sm:$0xff]   ;;  %v3237_v38 = vld [vmem:[#allocation5 + $0x120] ss:$16 sps:$4 sm:$0xff]  }
  0x6f   :  { %1752 = vmatpush1.bf16.msra.mxu0 %v3208_v19  ;;  %1710 = vmatprep.subr.bf16.mxu1 %v3209_v20  ;;  %v3235_v37 = vld [vmem:[#allocation5 + $0x324] ss:$16 sps:$4 sm:$0xff]   ;;  %v3238_v39 = vld [vmem:[#allocation5 + $0x320] ss:$16 sps:$4 sm:$0xff]   ;;  %v3290_v19 = vld [vmem:[#allocation5 + $0x48] ss:$16 sps:$4 sm:$0xff]  }
  0x70   :  { %1753 = vmatprep.subr.bf16.mxu0 %v3211_v21  ;;  %v3239_v40 = vld [vmem:[#allocation5 + $0x144] ss:$16 sps:$4 sm:$0xff]   ;;  %v3243_v42 = vld [vmem:[#allocation5 + $0x140] ss:$16 sps:$4 sm:$0xff]   ;;  %v3298_v21 = vld [vmem:[#allocation5 + $0x6c] ss:$16 sps:$4 sm:$0xff]  }
  0x71   :  { %v3241_v41 = vld [vmem:[#allocation5 + $0x344] ss:$16 sps:$4 sm:$0xff]   ;;  %v3244_v43 = vld [vmem:[#allocation5 + $0x340] ss:$16 sps:$4 sm:$0xff]  }
  0x72   :  { %1711 = vmatpush1.bf16.msra.mxu1 %v3213_v22  ;;  %v3245_v44 = vld [vmem:[#allocation5 + $0x164] ss:$16 sps:$4 sm:$0xff]   ;;  %v3249_v46 = vld [vmem:[#allocation5 + $0x160] ss:$16 sps:$4 sm:$0xff]  }
  0x73   :  { %1754 = vmatpush1.bf16.msra.mxu0 %v3214_v23  ;;  %1712 = vmatprep.subr.bf16.mxu1 %v3215_v24  ;;  %v3247_v45 = vld [vmem:[#allocation5 + $0x364] ss:$16 sps:$4 sm:$0xff]   ;;  %v3250_v47 = vld [vmem:[#allocation5 + $0x360] ss:$16 sps:$4 sm:$0xff]   ;;  %v3296_v23 = vld [vmem:[#allocation5 + $0x68] ss:$16 sps:$4 sm:$0xff]  }
  0x74   :  { %1755 = vmatprep.subr.bf16.mxu0 %v3217_v25  ;;  %v94_v48 = vld [vmem:[#allocation2] sm:$0xff]  ;;  %v3304_v25 = vld [vmem:[#allocation5 + $0x8c] ss:$16 sps:$4 sm:$0xff]  }
  0x75   :  { %v98_v49 = vld [vmem:[#allocation2 + $0x20] sm:$0xff] }
  0x76   :  { %1713 = vmatpush1.bf16.msra.mxu1 %v3219_v26  ;;  %v3251_v52 = vld [vmem:[#allocation5 + $0x184] ss:$16 sps:$4 sm:$0xff]   ;;  %v2750_v53 = vcombine.high %v94_v48, %v98_v49  ;;  %v3255_v56 = vld [vmem:[#allocation5 + $0x180] ss:$16 sps:$4 sm:$0xff]   ;;  %v3935_v8 = vcombine.low %v94_v48, %v98_v49  ;;  %v3334_v48 = vld [vmem:[#allocation5 + $0x12c] ss:$16 sps:$4 sm:$0xff]  }
  0x77   :  { %1756 = vmatpush1.bf16.msra.mxu0 %v3220_v27  ;;  %1714 = vmatprep.subr.bf16.mxu1 %v3221_v28  ;;  %v3253_v54 = vld [vmem:[#allocation5 + $0x384] ss:$16 sps:$4 sm:$0xff]   ;;  %v3256_v57 = vld [vmem:[#allocation5 + $0x380] ss:$16 sps:$4 sm:$0xff]   ;;  %v3302_v27 = vld [vmem:[#allocation5 + $0x88] ss:$16 sps:$4 sm:$0xff]  }
  0x78   :  { %1757 = vmatprep.subr.bf16.mxu0 %v3223_v29  ;;  %1732 = vmatprep.mubr.bf16.mxu1 %v2750_v53  ;;  %v3257_v58 = vld [vmem:[#allocation5 + $0x1a4] ss:$16 sps:$4 sm:$0xff]   ;;  %v3261_v60 = vld [vmem:[#allocation5 + $0x1a0] ss:$16 sps:$4 sm:$0xff]   ;;  %v3310_v29 = vld [vmem:[#allocation5 + $0xac] ss:$16 sps:$4 sm:$0xff]  }
  0x79   :  { %v3259_v59 = vld [vmem:[#allocation5 + $0x3a4] ss:$16 sps:$4 sm:$0xff]   ;;  %v3262_v61 = vld [vmem:[#allocation5 + $0x3a0] ss:$16 sps:$4 sm:$0xff]  }
  0x7a   :  { %1715 = vmatpush1.bf16.msra.mxu1 %v3225_v30  ;;  %v3263_v62 = vld [vmem:[#allocation5 + $0x1c4] ss:$16 sps:$4 sm:$0xff]   ;;  %v3267_v0 = vld [vmem:[#allocation5 + $0x1c0] ss:$16 sps:$4 sm:$0xff]  }
  0x7b   :  { %1758 = vmatpush1.bf16.msra.mxu0 %v3226_v31  ;;  %1716 = vmatprep.subr.bf16.mxu1 %v3227_v32  ;;  %v3265_v63 = vld [vmem:[#allocation5 + $0x3c4] ss:$16 sps:$4 sm:$0xff]   ;;  %v3268_v1 = vld [vmem:[#allocation5 + $0x3c0] ss:$16 sps:$4 sm:$0xff]   ;;  %v3308_v31 = vld [vmem:[#allocation5 + $0xa8] ss:$16 sps:$4 sm:$0xff]  }
  0x7c   :  { %1759 = vmatprep.subr.bf16.mxu0 %v3229_v33  ;;  %v3269_v2 = vld [vmem:[#allocation5 + $0x1e4] ss:$16 sps:$4 sm:$0xff]   ;;  %v3273_v4 = vld [vmem:[#allocation5 + $0x1e0] ss:$16 sps:$4 sm:$0xff]   ;;  %v3316_v33 = vld [vmem:[#allocation5 + $0xcc] ss:$16 sps:$4 sm:$0xff]  }
  0x7d   :  { %v3271_v3 = vld [vmem:[#allocation5 + $0x3e4] ss:$16 sps:$4 sm:$0xff]   ;;  %v3274_v5 = vld [vmem:[#allocation5 + $0x3e0] ss:$16 sps:$4 sm:$0xff]  }
  0x7e   :  { %1717 = vmatpush1.bf16.msra.mxu1 %v3231_v34  ;;  %v3277_v6 = vld [vmem:[#allocation5 + $0x404] ss:$16 sps:$4 sm:$0xff]   ;;  %v3275_v10 = vld [vmem:[#allocation5 + $0x400] ss:$16 sps:$4 sm:$0xff]  }
  0x7f   :  { %1760 = vmatpush1.bf16.msra.mxu0 %v3232_v35  ;;  %1718 = vmatprep.subr.bf16.mxu1 %v3233_v36  ;;  %v3283_v12 = vld [vmem:[#allocation5 + $0x424] ss:$16 sps:$4 sm:$0xff]   ;;  %v3281_v14 = vld [vmem:[#allocation5 + $0x420] ss:$16 sps:$4 sm:$0xff]  }
  0x80   :  { %1761 = vmatprep.subr.bf16.mxu0 %v3235_v37  ;;  %v3289_v16 = vld [vmem:[#allocation5 + $0x444] ss:$16 sps:$4 sm:$0xff]   ;;  %v3287_v18 = vld [vmem:[#allocation5 + $0x440] ss:$16 sps:$4 sm:$0xff]   ;;  %v3314_v37 = vld [vmem:[#allocation5 + $0xc8] ss:$16 sps:$4 sm:$0xff]  }
  0x81   :  { %v3295_v20 = vld [vmem:[#allocation5 + $0x464] ss:$16 sps:$4 sm:$0xff]   ;;  %v3293_v22 = vld [vmem:[#allocation5 + $0x460] ss:$16 sps:$4 sm:$0xff]  }
  0x82   :  { %1719 = vmatpush1.bf16.msra.mxu1 %v3237_v38  ;;  %v3301_v24 = vld [vmem:[#allocation5 + $0x484] ss:$16 sps:$4 sm:$0xff]   ;;  %v3299_v26 = vld [vmem:[#allocation5 + $0x480] ss:$16 sps:$4 sm:$0xff]  }
  0x83   :  { %1762 = vmatpush1.bf16.msra.mxu0 %v3238_v39  ;;  %1720 = vmatprep.subr.bf16.mxu1 %v3239_v40  ;;  %v3307_v28 = vld [vmem:[#allocation5 + $0x4a4] ss:$16 sps:$4 sm:$0xff]   ;;  %v3305_v30 = vld [vmem:[#allocation5 + $0x4a0] ss:$16 sps:$4 sm:$0xff]   ;;  %v3322_v40 = vld [vmem:[#allocation5 + $0xec] ss:$16 sps:$4 sm:$0xff]  }
  0x84   :  { %1763 = vmatprep.subr.bf16.mxu0 %v3241_v41  ;;  %v3313_v32 = vld [vmem:[#allocation5 + $0x4c4] ss:$16 sps:$4 sm:$0xff]   ;;  %v3311_v36 = vld [vmem:[#allocation5 + $0x4c0] ss:$16 sps:$4 sm:$0xff]  }
  0x85   :  { %v3941_v34 = vld [vmem:[#allocation2 + $0x10] sm:$0xff] }
  0x86   :  { %1721 = vmatpush1.bf16.msra.mxu1 %v3243_v42  ;;  %v3943_v35 = vld [vmem:[#allocation2 + $0x30] sm:$0xff]  ;;  %v3320_v42 = vld [vmem:[#allocation5 + $0xe8] ss:$16 sps:$4 sm:$0xff]  }
  0x87   :  { %1764 = vmatpush1.bf16.msra.mxu0 %v3244_v43  ;;  %1722 = vmatprep.subr.bf16.mxu1 %v3245_v44  ;;  %v3947_v38 = vcombine.high %v3941_v34, %v3943_v35  ;;  %v3319_v39 = vld [vmem:[#allocation5 + $0x4e4] ss:$16 sps:$4 sm:$0xff]   ;;  %v3317_v41 = vld [vmem:[#allocation5 + $0x4e0] ss:$16 sps:$4 sm:$0xff]   ;;  %v3328_v44 = vld [vmem:[#allocation5 + $0x10c] ss:$16 sps:$4 sm:$0xff]  }
  0x88   :  { %1765 = vmatprep.subr.bf16.mxu0 %v3247_v45  ;;  %v3325_v43 = vld [vmem:[#allocation5 + $0x504] ss:$16 sps:$4 sm:$0xff]   ;;  %v3323_v45 = vld [vmem:[#allocation5 + $0x500] ss:$16 sps:$4 sm:$0xff]  }
  0x89   :  { %v3329_v49 = vld [vmem:[#allocation5 + $0x520] ss:$16 sps:$4 sm:$0xff]   ;;  %v3337_v51 = vld [vmem:[#allocation5 + $0x544] ss:$16 sps:$4 sm:$0xff]  }
  0x8a   :  { %1723 = vmatpush1.bf16.msra.mxu1 %v3249_v46  ;;  %v3326_v46 = vld [vmem:[#allocation5 + $0x108] ss:$16 sps:$4 sm:$0xff]  }
  0x8b   :  { %1766 = vmatpush1.bf16.msra.mxu0 %v3250_v47  ;;  %1724 = vmatprep.subr.bf16.mxu1 %v3251_v52  ;;  %v3331_v47 = vld [vmem:[#allocation5 + $0x524] ss:$16 sps:$4 sm:$0xff]   ;;  %v3340_v52 = vld [vmem:[#allocation5 + $0x14c] ss:$16 sps:$4 sm:$0xff]  }
  0x8c   :  { %1767 = vmatprep.subr.bf16.mxu0 %v3253_v54  ;;  %v3338_v54 = vld [vmem:[#allocation5 + $0x148] ss:$16 sps:$4 sm:$0xff]  }
  0x8e   :  { %1725 = vmatpush1.bf16.msra.mxu1 %v3255_v56  ;;  %v3343_v56 = vld [vmem:[#allocation5 + $0x564] ss:$16 sps:$4 sm:$0xff]  }
  0x8f   :  { %1768 = vmatpush1.bf16.msra.mxu0 %v3256_v57  ;;  %1726 = vmatprep.subr.bf16.mxu1 %v3257_v58  ;;  %v3346_v57 = vld [vmem:[#allocation5 + $0x16c] ss:$16 sps:$4 sm:$0xff]   ;;  %v3341_v58 = vld [vmem:[#allocation5 + $0x560] ss:$16 sps:$4 sm:$0xff]  }
  0x90   :  { %1769 = vmatprep.subr.bf16.mxu0 %v3259_v59  ;;  %v3344_v59 = vld [vmem:[#allocation5 + $0x168] ss:$16 sps:$4 sm:$0xff]  }
  0x92   :  { %1727 = vmatpush1.bf16.msra.mxu1 %v3261_v60  ;;  %v3349_v60 = vld [vmem:[#allocation5 + $0x584] ss:$16 sps:$4 sm:$0xff]  }
  0x93   :  { %1770 = vmatpush1.bf16.msra.mxu0 %v3262_v61  ;;  %1728 = vmatprep.subr.bf16.mxu1 %v3263_v62  ;;  %v3352_v61 = vld [vmem:[#allocation5 + $0x18c] ss:$16 sps:$4 sm:$0xff]   ;;  %v3347_v62 = vld [vmem:[#allocation5 + $0x580] ss:$16 sps:$4 sm:$0xff]  }
  0x94   :  { %1771 = vmatprep.subr.bf16.mxu0 %v3265_v63  ;;  %v3350_v63 = vld [vmem:[#allocation5 + $0x188] ss:$16 sps:$4 sm:$0xff]  }
  0x96   :  { %1729 = vmatpush1.bf16.msra.mxu1 %v3267_v0  ;;  %v3355_v0 = vld [vmem:[#allocation5 + $0x5a4] ss:$16 sps:$4 sm:$0xff]  }
  0x97   :  { %1772 = vmatpush1.bf16.msra.mxu0 %v3268_v1  ;;  %1730 = vmatprep.subr.bf16.mxu1 %v3269_v2  ;;  %v3358_v1 = vld [vmem:[#allocation5 + $0x1ac] ss:$16 sps:$4 sm:$0xff]   ;;  %v3353_v2 = vld [vmem:[#allocation5 + $0x5a0] ss:$16 sps:$4 sm:$0xff]  }
  0x98   :  { %1773 = vmatprep.subr.bf16.mxu0 %v3271_v3  ;;  %v3356_v3 = vld [vmem:[#allocation5 + $0x1a8] ss:$16 sps:$4 sm:$0xff]  }
  0x9a   :  { %1731 = vmatpush1.bf16.msra.mxu1 %v3273_v4  ;;  %v3361_v4 = vld [vmem:[#allocation5 + $0x5c4] ss:$16 sps:$4 sm:$0xff]  }
  0x9b   :  { %1774 = vmatpush1.bf16.msra.mxu0 %v3274_v5  ;;  %1872 = vmatprep.subr.bf16.mxu1 %v3280_v7  ;;  %v3364_v5 = vld [vmem:[#allocation5 + $0x1cc] ss:$16 sps:$4 sm:$0xff]   ;;  %v3362_v7 = vld [vmem:[#allocation5 + $0x1c8] ss:$16 sps:$4 sm:$0xff]  }
  0x9c   :  { %1786 = vmatprep.subr.bf16.mxu0 %v3277_v6  ;;  %v3359_v6 = vld [vmem:[#allocation5 + $0x5c0] ss:$16 sps:$4 sm:$0xff]  }
  0x9d   :  { %1733 = vmatmul.mubr.bf16.vlgmr.msra.gmra.mrb[0].mxu1 %v3935_v8 }
  0x9e   :  { %1776 = vmatmul.mubr.bf16.vlgmr.msra.gmra.mrb[0].mxu0 %v3937_v9  ;;  %1873 = vmatpush1.bf16.msra.mxu1 %v3278_v11  ;;  %v3370_v11 = vld [vmem:[#allocation5 + $0x1ec] ss:$16 sps:$4 sm:$0xff]  }
  0x9f   :  { %1787 = vmatpush1.bf16.msra.mxu0 %v3275_v10  ;;  %1874 = vmatprep.subr.bf16.mxu1 %v3286_v13  ;;  %v3367_v10 = vld [vmem:[#allocation5 + $0x5e4] ss:$16 sps:$4 sm:$0xff]   ;;  %v3368_v13 = vld [vmem:[#allocation5 + $0x1e8] ss:$16 sps:$4 sm:$0xff]  }
  0xa0   :  { %1788 = vmatprep.subr.bf16.mxu0 %v3283_v12  ;;  %1904 = vmatprep.mubr.bf16.mxu1 %v2750_v53  ;;  %v3335_v53 = vld [vmem:[#allocation5 + $0x540] ss:$16 sps:$4 sm:$0xff]  }
  0xa1   :  { %1818 = vmatprep.mubr.bf16.mxu0 %v3947_v38  ;;  %v3365_v12 = vld [vmem:[#allocation5 + $0x5e0] ss:$16 sps:$4 sm:$0xff]  }
  0xa2   :  { %1875 = vmatpush1.bf16.msra.mxu1 %v3284_v15  ;;  %v3376_v15 = vld [vmem:[#allocation5 + $0x20c] ss:$16 sps:$4 sm:$0xff]  }
  0xa3   :  { %1789 = vmatpush1.bf16.msra.mxu0 %v3281_v14  ;;  %1876 = vmatprep.subr.bf16.mxu1 %v3292_v17  ;;  %v3373_v14 = vld [vmem:[#allocation5 + $0x604] ss:$16 sps:$4 sm:$0xff]   ;;  %v3371_v17 = vld [vmem:[#allocation5 + $0x600] ss:$16 sps:$4 sm:$0xff]  }
  0xa4   :  { %1790 = vmatprep.subr.bf16.mxu0 %v3289_v16  ;;  %v3952_v16 = vcombine.low %v3941_v34, %v3943_v35  ;;  %v3400_v34 = vld [vmem:[#allocation5 + $0x28c] ss:$16 sps:$4 sm:$0xff]   ;;  %v3395_v35 = vld [vmem:[#allocation5 + $0x680] ss:$16 sps:$4 sm:$0xff]  }
  0xa6   :  { %1877 = vmatpush1.bf16.msra.mxu1 %v3290_v19  ;;  %v3379_v19 = vld [vmem:[#allocation5 + $0x624] ss:$16 sps:$4 sm:$0xff]  }
  0xa7   :  { %1791 = vmatpush1.bf16.msra.mxu0 %v3287_v18  ;;  %1878 = vmatprep.subr.bf16.mxu1 %v3298_v21  ;;  %v3374_v18 = vld [vmem:[#allocation5 + $0x208] ss:$16 sps:$4 sm:$0xff]  }
  0xa8   :  { %1792 = vmatprep.subr.bf16.mxu0 %v3295_v20  ;;  %v3382_v20 = vld [vmem:[#allocation5 + $0x22c] ss:$16 sps:$4 sm:$0xff]  }
  0xa9   :  { %v3954_v21 = vld [vmem:[#allocation2 + $0x18] sm:$0xff] }
  0xaa   :  { %1879 = vmatpush1.bf16.msra.mxu1 %v3296_v23  ;;  %v3377_v23 = vld [vmem:[#allocation5 + $0x620] ss:$16 sps:$4 sm:$0xff]  }
  0xab   :  { %1793 = vmatpush1.bf16.msra.mxu0 %v3293_v22  ;;  %1880 = vmatprep.subr.bf16.mxu1 %v3304_v25  ;;  %v3956_v22 = vld [vmem:[#allocation2 + $0x38] sm:$0xff] }
  0xac   :  { %1794 = vmatprep.subr.bf16.mxu0 %v3301_v24  ;;  %v3380_v24 = vld [vmem:[#allocation5 + $0x228] ss:$16 sps:$4 sm:$0xff]   ;;  %v3962_v25 = vcombine.high %v3954_v21, %v3956_v22 }
  0xae   :  { %1881 = vmatpush1.bf16.msra.mxu1 %v3302_v27  ;;  %v3388_v27 = vld [vmem:[#allocation5 + $0x24c] ss:$16 sps:$4 sm:$0xff]  }
  0xaf   :  { %1795 = vmatpush1.bf16.msra.mxu0 %v3299_v26  ;;  %1882 = vmatprep.subr.bf16.mxu1 %v3310_v29  ;;  %v3385_v26 = vld [vmem:[#allocation5 + $0x644] ss:$16 sps:$4 sm:$0xff]   ;;  %v3386_v29 = vld [vmem:[#allocation5 + $0x248] ss:$16 sps:$4 sm:$0xff]  }
  0xb0   :  { %1796 = vmatprep.subr.bf16.mxu0 %v3307_v28  ;;  %v3383_v28 = vld [vmem:[#allocation5 + $0x640] ss:$16 sps:$4 sm:$0xff]  }
  0xb2   :  { %1883 = vmatpush1.bf16.msra.mxu1 %v3308_v31  ;;  %v3389_v31 = vld [vmem:[#allocation5 + $0x660] ss:$16 sps:$4 sm:$0xff]  }
  0xb3   :  { %1797 = vmatpush1.bf16.msra.mxu0 %v3305_v30  ;;  %1884 = vmatprep.subr.bf16.mxu1 %v3316_v33  ;;  %v3394_v30 = vld [vmem:[#allocation5 + $0x26c] ss:$16 sps:$4 sm:$0xff]   ;;  %v3397_v33 = vld [vmem:[#allocation5 + $0x684] ss:$16 sps:$4 sm:$0xff]  }
  0xb4   :  { %1798 = vmatprep.subr.bf16.mxu0 %v3313_v32  ;;  %v3392_v32 = vld [vmem:[#allocation5 + $0x268] ss:$16 sps:$4 sm:$0xff]  }
  0xb6   :  { %1885 = vmatpush1.bf16.msra.mxu1 %v3314_v37  ;;  %v3406_v37 = vld [vmem:[#allocation5 + $0x2ac] ss:$16 sps:$4 sm:$0xff]  }
  0xb7   :  { %1799 = vmatpush1.bf16.msra.mxu0 %v3311_v36  ;;  %1886 = vmatprep.subr.bf16.mxu1 %v3322_v40  ;;  %v3398_v36 = vld [vmem:[#allocation5 + $0x288] ss:$16 sps:$4 sm:$0xff]  }
  0xb8   :  { %1800 = vmatprep.subr.bf16.mxu0 %v3319_v39  ;;  %v3401_v39 = vld [vmem:[#allocation5 + $0x6a0] ss:$16 sps:$4 sm:$0xff]   ;;  %v3404_v40 = vld [vmem:[#allocation5 + $0x2a8] ss:$16 sps:$4 sm:$0xff]  }
  0xba   :  { %1887 = vmatpush1.bf16.msra.mxu1 %v3320_v42  ;;  %v3412_v42 = vld [vmem:[#allocation5 + $0x2cc] ss:$16 sps:$4 sm:$0xff]  }
  0xbb   :  { %1801 = vmatpush1.bf16.msra.mxu0 %v3317_v41  ;;  %1888 = vmatprep.subr.bf16.mxu1 %v3328_v44  ;;  %v3409_v41 = vld [vmem:[#allocation5 + $0x6c4] ss:$16 sps:$4 sm:$0xff]   ;;  %v3410_v44 = vld [vmem:[#allocation5 + $0x2c8] ss:$16 sps:$4 sm:$0xff]  }
  0xbc   :  { %1802 = vmatprep.subr.bf16.mxu0 %v3325_v43  ;;  %v3407_v43 = vld [vmem:[#allocation5 + $0x6c0] ss:$16 sps:$4 sm:$0xff]  }
  0xbe   :  { %1889 = vmatpush1.bf16.msra.mxu1 %v3326_v46  ;;  %v3418_v46 = vld [vmem:[#allocation5 + $0x2ec] ss:$16 sps:$4 sm:$0xff]  }
  0xbf   :  { %1803 = vmatpush1.bf16.msra.mxu0 %v3323_v45  ;;  %1890 = vmatprep.subr.bf16.mxu1 %v3334_v48  ;;  %v3415_v45 = vld [vmem:[#allocation5 + $0x6e4] ss:$16 sps:$4 sm:$0xff]   ;;  %v3416_v48 = vld [vmem:[#allocation5 + $0x2e8] ss:$16 sps:$4 sm:$0xff]  }
  0xc0   :  { %1804 = vmatprep.subr.bf16.mxu0 %v3331_v47  ;;  %v3413_v47 = vld [vmem:[#allocation5 + $0x6e0] ss:$16 sps:$4 sm:$0xff]  }
  0xc2   :  { %1891 = vmatpush1.bf16.msra.mxu1 %v3332_v50  ;;  %v3424_v50 = vld [vmem:[#allocation5 + $0x30c] ss:$16 sps:$4 sm:$0xff]  }
  0xc3   :  { %1805 = vmatpush1.bf16.msra.mxu0 %v3329_v49  ;;  %1892 = vmatprep.subr.bf16.mxu1 %v3340_v52  ;;  %v3421_v49 = vld [vmem:[#allocation5 + $0x704] ss:$16 sps:$4 sm:$0xff]   ;;  %v3422_v52 = vld [vmem:[#allocation5 + $0x308] ss:$16 sps:$4 sm:$0xff]  }
  0xc4   :  { %1806 = vmatprep.subr.bf16.mxu0 %v3337_v51  ;;  %v3419_v51 = vld [vmem:[#allocation5 + $0x700] ss:$16 sps:$4 sm:$0xff]  }
  0xc6   :  { %1893 = vmatpush1.bf16.msra.mxu1 %v3338_v54  ;;  %v3430_v54 = vld [vmem:[#allocation5 + $0x32c] ss:$16 sps:$4 sm:$0xff]  }
  0xc7   :  { %1807 = vmatpush1.bf16.msra.mxu0 %v3335_v53  ;;  %1894 = vmatprep.subr.bf16.mxu1 %v3346_v57  ;;  %v3427_v53 = vld [vmem:[#allocation5 + $0x724] ss:$16 sps:$4 sm:$0xff]   ;;  %v3428_v57 = vld [vmem:[#allocation5 + $0x328] ss:$16 sps:$4 sm:$0xff]  }
  0xc8   :  { %1808 = vmatprep.subr.bf16.mxu0 %v3343_v56  ;;  %v3425_v56 = vld [vmem:[#allocation5 + $0x720] ss:$16 sps:$4 sm:$0xff]  }
  0xca   :  { %1895 = vmatpush1.bf16.msra.mxu1 %v3344_v59  ;;  %v3436_v59 = vld [vmem:[#allocation5 + $0x34c] ss:$16 sps:$4 sm:$0xff]  }
  0xcb   :  { %1809 = vmatpush1.bf16.msra.mxu0 %v3341_v58  ;;  %1896 = vmatprep.subr.bf16.mxu1 %v3352_v61  ;;  %v3433_v58 = vld [vmem:[#allocation5 + $0x744] ss:$16 sps:$4 sm:$0xff]   ;;  %v3434_v61 = vld [vmem:[#allocation5 + $0x348] ss:$16 sps:$4 sm:$0xff]  }
  0xcc   :  { %1810 = vmatprep.subr.bf16.mxu0 %v3349_v60  ;;  %v3431_v60 = vld [vmem:[#allocation5 + $0x740] ss:$16 sps:$4 sm:$0xff]  }
  0xce   :  { %1897 = vmatpush1.bf16.msra.mxu1 %v3350_v63  ;;  %v3442_v63 = vld [vmem:[#allocation5 + $0x36c] ss:$16 sps:$4 sm:$0xff]  }
  0xcf   :  { %1811 = vmatpush1.bf16.msra.mxu0 %v3347_v62  ;;  %1898 = vmatprep.subr.bf16.mxu1 %v3358_v1  ;;  %v3439_v62 = vld [vmem:[#allocation5 + $0x764] ss:$16 sps:$4 sm:$0xff]   ;;  %v3440_v1 = vld [vmem:[#allocation5 + $0x368] ss:$16 sps:$4 sm:$0xff]  }
  0xd0   :  { %1812 = vmatprep.subr.bf16.mxu0 %v3355_v0  ;;  %v3437_v0 = vld [vmem:[#allocation5 + $0x760] ss:$16 sps:$4 sm:$0xff]  }
  0xd2   :  { %1899 = vmatpush1.bf16.msra.mxu1 %v3356_v3  ;;  %v3448_v3 = vld [vmem:[#allocation5 + $0x38c] ss:$16 sps:$4 sm:$0xff]  }
  0xd3   :  { %1813 = vmatpush1.bf16.msra.mxu0 %v3353_v2  ;;  %1900 = vmatprep.subr.bf16.mxu1 %v3364_v5  ;;  %v3445_v2 = vld [vmem:[#allocation5 + $0x784] ss:$16 sps:$4 sm:$0xff]   ;;  %v3446_v5 = vld [vmem:[#allocation5 + $0x388] ss:$16 sps:$4 sm:$0xff]  }
  0xd4   :  { %1814 = vmatprep.subr.bf16.mxu0 %v3361_v4  ;;  %v3443_v4 = vld [vmem:[#allocation5 + $0x780] ss:$16 sps:$4 sm:$0xff]  }
  0xd6   :  { %1901 = vmatpush1.bf16.msra.mxu1 %v3362_v7  ;;  %v3454_v7 = vld [vmem:[#allocation5 + $0x3ac] ss:$16 sps:$4 sm:$0xff]  }
  0xd7   :  { %1815 = vmatpush1.bf16.msra.mxu0 %v3359_v6  ;;  %1902 = vmatprep.subr.bf16.mxu1 %v3370_v11  ;;  %v3451_v6 = vld [vmem:[#allocation5 + $0x7a4] ss:$16 sps:$4 sm:$0xff]   ;;  %v3452_v11 = vld [vmem:[#allocation5 + $0x3a8] ss:$16 sps:$4 sm:$0xff]  }
  0xd8   :  { %1816 = vmatprep.subr.bf16.mxu0 %v3367_v10  ;;  %v3449_v10 = vld [vmem:[#allocation5 + $0x7a0] ss:$16 sps:$4 sm:$0xff]  }
  0xda   :  { %1903 = vmatpush1.bf16.msra.mxu1 %v3368_v13  ;;  %v3460_v13 = vld [vmem:[#allocation5 + $0x3cc] ss:$16 sps:$4 sm:$0xff]  }
  0xdb   :  { %1817 = vmatpush1.bf16.msra.mxu0 %v3365_v12  ;;  %1915 = vmatprep.subr.bf16.mxu1 %v3376_v15  ;;  %v3457_v12 = vld [vmem:[#allocation5 + $0x7c4] ss:$16 sps:$4 sm:$0xff]   ;;  %v3458_v15 = vld [vmem:[#allocation5 + $0x3c8] ss:$16 sps:$4 sm:$0xff]  }
  0xdc   :  { %1829 = vmatprep.subr.bf16.mxu0 %v3373_v14  ;;  %v3455_v14 = vld [vmem:[#allocation5 + $0x7c0] ss:$16 sps:$4 sm:$0xff]  }
  0xdd   :  { %1905 = vmatmul.mubr.bf16.vlgmr.msra.gmra.mrb[4].mxu1 %v3935_v8  ;;  %v3391_v8 = vld [vmem:[#allocation5 + $0x664] ss:$16 sps:$4 sm:$0xff]  }
  0xde   :  { %1819 = vmatmul.mubr.bf16.vlgmr.msra.gmra.mrb[0].mxu0 %v3952_v16  ;;  %1916 = vmatpush1.bf16.msra.mxu1 %v3374_v18  ;;  %v3466_v18 = vld [vmem:[#allocation5 + $0x3ec] ss:$16 sps:$4 sm:$0xff]  }
  0xdf   :  { %1830 = vmatpush1.bf16.msra.mxu0 %v3371_v17  ;;  %1917 = vmatprep.subr.bf16.mxu1 %v3382_v20  ;;  %v3463_v17 = vld [vmem:[#allocation5 + $0x7e4] ss:$16 sps:$4 sm:$0xff]   ;;  %v3464_v20 = vld [vmem:[#allocation5 + $0x3e8] ss:$16 sps:$4 sm:$0xff]  }
  0xe0   :  { %1831 = vmatprep.subr.bf16.mxu0 %v3379_v19  ;;  %1861 = vmatprep.mubr.bf16.mxu0 %v3962_v25  ;;  %v3461_v19 = vld [vmem:[#allocation5 + $0x7e0] ss:$16 sps:$4 sm:$0xff]  }
  0xe1   :  { %1947 = vmatprep.mubr.bf16.mxu1 %v3932_v55  ;;  %v3403_v55 = vld [vmem:[#allocation5 + $0x6a4] ss:$16 sps:$4 sm:$0xff]  }
  0xe2   :  { %1918 = vmatpush1.bf16.msra.mxu1 %v3380_v24  ;;  %v3467_v24 = vld [vmem:[#allocation5 + $0x408] ss:$16 sps:$4 sm:$0xff]  }
  0xe3   :  { %1832 = vmatpush1.bf16.msra.mxu0 %v3377_v23  ;;  %1919 = vmatprep.subr.bf16.mxu1 %v3388_v27  ;;  %v3469_v23 = vld [vmem:[#allocation5 + $0x40c] ss:$16 sps:$4 sm:$0xff]  }
  0xe4   :  { %1833 = vmatprep.subr.bf16.mxu0 %v3385_v26  ;;  %v3968_v26 = vcombine.low %v3954_v21, %v3956_v22  ;;  %v3472_v27 = vld [vmem:[#allocation5 + $0x42c] ss:$16 sps:$4 sm:$0xff]   ;;  %v3571_v22 = vld [vmem:[#allocation8 + $0x24] ss:$8 sps:$4 sm:$0xff]  }
  0xe5   :  { %v3566_v21 = vld [vmem:[#allocation8 + $0x10] ss:$8 sps:$4 sm:$0xff]  }
  0xe6   :  { %1920 = vmatpush1.bf16.msra.mxu1 %v3386_v29  ;;  %v3565_v29 = vld [vmem:[#allocation8 + $0x4] ss:$8 sps:$4 sm:$0xff]  }
  0xe7   :  { %1834 = vmatpush1.bf16.msra.mxu0 %v3383_v28  ;;  %1921 = vmatprep.subr.bf16.mxu1 %v3394_v30  ;;  %v3563_v28 = vld [vmem:[#allocation8] ss:$8 sps:$4 sm:$0xff]   ;;  %v3568_v30 = vld [vmem:[#allocation8 + $0x14] ss:$8 sps:$4 sm:$0xff]  }
  0xe8   :  { %1835 = vmatprep.subr.bf16.mxu0 %v3391_v8  ;;  %v3470_v8 = vld [vmem:[#allocation5 + $0x428] ss:$16 sps:$4 sm:$0xff]  }
  0xea   :  { %1922 = vmatpush1.bf16.msra.mxu1 %v3392_v32  ;;  %v3473_v32 = vld [vmem:[#allocation5 + $0x448] ss:$16 sps:$4 sm:$0xff]  }
  0xeb   :  { %1836 = vmatpush1.bf16.msra.mxu0 %v3389_v31  ;;  %1923 = vmatprep.subr.bf16.mxu1 %v3400_v34  ;;  %v3475_v31 = vld [vmem:[#allocation5 + $0x44c] ss:$16 sps:$4 sm:$0xff]   ;;  %v3476_v34 = vld [vmem:[#allocation5 + $0x468] ss:$16 sps:$4 sm:$0xff]  }
  0xec   :  { %1837 = vmatprep.subr.bf16.mxu0 %v3397_v33  ;;  %v3478_v33 = vld [vmem:[#allocation5 + $0x46c] ss:$16 sps:$4 sm:$0xff]  }
  0xee   :  { %1924 = vmatpush1.bf16.msra.mxu1 %v3398_v36  ;;  %v3574_v36 = vld [vmem:[#allocation8 + $0x34] ss:$8 sps:$4 sm:$0xff]  }
  0xef   :  { %1838 = vmatpush1.bf16.msra.mxu0 %v3395_v35  ;;  %1925 = vmatprep.subr.bf16.mxu1 %v3406_v37  ;;  %v3481_v35 = vld [vmem:[#allocation5 + $0x48c] ss:$16 sps:$4 sm:$0xff]   ;;  %v3479_v37 = vld [vmem:[#allocation5 + $0x488] ss:$16 sps:$4 sm:$0xff]  }
  0xf0   :  { %1839 = vmatprep.subr.bf16.mxu0 %v3403_v55  ;;  %v3577_v55 = vld [vmem:[#allocation8 + $0x44] ss:$8 sps:$4 sm:$0xff]  }
  0xf2   :  { %1926 = vmatpush1.bf16.msra.mxu1 %v3404_v40  ;;  %v3575_v40 = vld [vmem:[#allocation8 + $0x40] ss:$8 sps:$4 sm:$0xff]  }
  0xf3   :  { %1840 = vmatpush1.bf16.msra.mxu0 %v3401_v39  ;;  %1927 = vmatprep.subr.bf16.mxu1 %v3412_v42  ;;  %v3484_v39 = vld [vmem:[#allocation5 + $0x4ac] ss:$16 sps:$4 sm:$0xff]   ;;  %v3482_v42 = vld [vmem:[#allocation5 + $0x4a8] ss:$16 sps:$4 sm:$0xff]  }
  0xf4   :  { %1841 = vmatprep.subr.bf16.mxu0 %v3409_v41  ;;  %v3580_v41 = vld [vmem:[#allocation8 + $0x54] ss:$8 sps:$4 sm:$0xff]  }
  0xf6   :  { %1928 = vmatpush1.bf16.msra.mxu1 %v3410_v44  ;;  %v3578_v44 = vld [vmem:[#allocation8 + $0x50] ss:$8 sps:$4 sm:$0xff]  }
  0xf7   :  { %1842 = vmatpush1.bf16.msra.mxu0 %v3407_v43  ;;  %1929 = vmatprep.subr.bf16.mxu1 %v3418_v46  ;;  %v3487_v43 = vld [vmem:[#allocation5 + $0x4cc] ss:$16 sps:$4 sm:$0xff]   ;;  %v3485_v46 = vld [vmem:[#allocation5 + $0x4c8] ss:$16 sps:$4 sm:$0xff]  }
  0xf8   :  { %1843 = vmatprep.subr.bf16.mxu0 %v3415_v45  ;;  %v3583_v45 = vld [vmem:[#allocation8 + $0x64] ss:$8 sps:$4 sm:$0xff]  }
  0xfa   :  { %1930 = vmatpush1.bf16.msra.mxu1 %v3416_v48  ;;  %v3581_v48 = vld [vmem:[#allocation8 + $0x60] ss:$8 sps:$4 sm:$0xff]  }
  0xfb   :  { %1844 = vmatpush1.bf16.msra.mxu0 %v3413_v47  ;;  %1931 = vmatprep.subr.bf16.mxu1 %v3424_v50  ;;  %v3490_v47 = vld [vmem:[#allocation5 + $0x4ec] ss:$16 sps:$4 sm:$0xff]   ;;  %v3488_v50 = vld [vmem:[#allocation5 + $0x4e8] ss:$16 sps:$4 sm:$0xff]  }
  0xfc   :  { %1845 = vmatprep.subr.bf16.mxu0 %v3421_v49  ;;  %v3586_v49 = vld [vmem:[#allocation8 + $0x74] ss:$8 sps:$4 sm:$0xff]  }
  0xfe   :  { %1932 = vmatpush1.bf16.msra.mxu1 %v3422_v52  ;;  %v3584_v52 = vld [vmem:[#allocation8 + $0x70] ss:$8 sps:$4 sm:$0xff]  }
  0xff   :  { %1846 = vmatpush1.bf16.msra.mxu0 %v3419_v51  ;;  %1933 = vmatprep.subr.bf16.mxu1 %v3430_v54  ;;  %v3493_v51 = vld [vmem:[#allocation5 + $0x50c] ss:$16 sps:$4 sm:$0xff]   ;;  %v3491_v54 = vld [vmem:[#allocation5 + $0x508] ss:$16 sps:$4 sm:$0xff]  }
 0x100   :  { %1847 = vmatprep.subr.bf16.mxu0 %v3427_v53  ;;  %v3589_v53 = vld [vmem:[#allocation8 + $0x84] ss:$8 sps:$4 sm:$0xff]  }
 0x102   :  { %1934 = vmatpush1.bf16.msra.mxu1 %v3428_v57  ;;  %v3587_v57 = vld [vmem:[#allocation8 + $0x80] ss:$8 sps:$4 sm:$0xff]  }
 0x103   :  { %1848 = vmatpush1.bf16.msra.mxu0 %v3425_v56  ;;  %1935 = vmatprep.subr.bf16.mxu1 %v3436_v59  ;;  %v3496_v56 = vld [vmem:[#allocation5 + $0x52c] ss:$16 sps:$4 sm:$0xff]   ;;  %v3494_v59 = vld [vmem:[#allocation5 + $0x528] ss:$16 sps:$4 sm:$0xff]  }
 0x104   :  { %1849 = vmatprep.subr.bf16.mxu0 %v3433_v58  ;;  %v3592_v58 = vld [vmem:[#allocation8 + $0x94] ss:$8 sps:$4 sm:$0xff]  }
 0x106   :  { %1936 = vmatpush1.bf16.msra.mxu1 %v3434_v61  ;;  %v3590_v61 = vld [vmem:[#allocation8 + $0x90] ss:$8 sps:$4 sm:$0xff]  }
 0x107   :  { %1850 = vmatpush1.bf16.msra.mxu0 %v3431_v60  ;;  %1937 = vmatprep.subr.bf16.mxu1 %v3442_v63  ;;  %v3499_v60 = vld [vmem:[#allocation5 + $0x54c] ss:$16 sps:$4 sm:$0xff]   ;;  %v3497_v63 = vld [vmem:[#allocation5 + $0x548] ss:$16 sps:$4 sm:$0xff]  }
 0x108   :  { %1851 = vmatprep.subr.bf16.mxu0 %v3439_v62  ;;  %v3595_v62 = vld [vmem:[#allocation8 + $0xa4] ss:$8 sps:$4 sm:$0xff]  }
 0x10a   :  { %1938 = vmatpush1.bf16.msra.mxu1 %v3440_v1  ;;  %v3593_v1 = vld [vmem:[#allocation8 + $0xa0] ss:$8 sps:$4 sm:$0xff]  }
 0x10b   :  { %1852 = vmatpush1.bf16.msra.mxu0 %v3437_v0  ;;  %1939 = vmatprep.subr.bf16.mxu1 %v3448_v3  ;;  %v3502_v0 = vld [vmem:[#allocation5 + $0x56c] ss:$16 sps:$4 sm:$0xff]   ;;  %v3500_v3 = vld [vmem:[#allocation5 + $0x568] ss:$16 sps:$4 sm:$0xff]  }
 0x10c   :  { %1853 = vmatprep.subr.bf16.mxu0 %v3445_v2  ;;  %v3598_v2 = vld [vmem:[#allocation8 + $0xb4] ss:$8 sps:$4 sm:$0xff]  }
 0x10e   :  { %1940 = vmatpush1.bf16.msra.mxu1 %v3446_v5  ;;  %v3596_v5 = vld [vmem:[#allocation8 + $0xb0] ss:$8 sps:$4 sm:$0xff]  }
 0x10f   :  { %1854 = vmatpush1.bf16.msra.mxu0 %v3443_v4  ;;  %1941 = vmatprep.subr.bf16.mxu1 %v3454_v7  ;;  %v3505_v4 = vld [vmem:[#allocation5 + $0x58c] ss:$16 sps:$4 sm:$0xff]   ;;  %v3503_v7 = vld [vmem:[#allocation5 + $0x588] ss:$16 sps:$4 sm:$0xff]  }
 0x110   :  { %1855 = vmatprep.subr.bf16.mxu0 %v3451_v6  ;;  %v3601_v6 = vld [vmem:[#allocation8 + $0xc4] ss:$8 sps:$4 sm:$0xff]  }
 0x112   :  { %1942 = vmatpush1.bf16.msra.mxu1 %v3452_v11  ;;  %v3599_v11 = vld [vmem:[#allocation8 + $0xc0] ss:$8 sps:$4 sm:$0xff]  }
 0x113   :  { %1856 = vmatpush1.bf16.msra.mxu0 %v3449_v10  ;;  %1943 = vmatprep.subr.bf16.mxu1 %v3460_v13  ;;  %v3508_v10 = vld [vmem:[#allocation5 + $0x5ac] ss:$16 sps:$4 sm:$0xff]   ;;  %v3506_v13 = vld [vmem:[#allocation5 + $0x5a8] ss:$16 sps:$4 sm:$0xff]  }
 0x114   :  { %1857 = vmatprep.subr.bf16.mxu0 %v3457_v12  ;;  %v3604_v12 = vld [vmem:[#allocation8 + $0xd4] ss:$8 sps:$4 sm:$0xff]  }
 0x116   :  { %1944 = vmatpush1.bf16.msra.mxu1 %v3458_v15  ;;  %v3602_v15 = vld [vmem:[#allocation8 + $0xd0] ss:$8 sps:$4 sm:$0xff]  }
 0x117   :  { %1858 = vmatpush1.bf16.msra.mxu0 %v3455_v14  ;;  %1945 = vmatprep.subr.bf16.mxu1 %v3466_v18  ;;  %v3511_v14 = vld [vmem:[#allocation5 + $0x5cc] ss:$16 sps:$4 sm:$0xff]  }
 0x118   :  { %1859 = vmatprep.subr.bf16.mxu0 %v3463_v17  ;;  %v3509_v17 = vld [vmem:[#allocation5 + $0x5c8] ss:$16 sps:$4 sm:$0xff]   ;;  %v3514_v18 = vld [vmem:[#allocation5 + $0x5ec] ss:$16 sps:$4 sm:$0xff]  }
 0x11a   :  { %1946 = vmatpush1.bf16.msra.mxu1 %v3464_v20  ;;  %v3517_v20 = vld [vmem:[#allocation5 + $0x60c] ss:$16 sps:$4 sm:$0xff]  }
 0x11b   :  { %1860 = vmatpush1.bf16.msra.mxu0 %v3461_v19  ;;  %1958 = vmatprep.subr.bf16.mxu1 %v3469_v23  ;;  %v3512_v19 = vld [vmem:[#allocation5 + $0x5e8] ss:$16 sps:$4 sm:$0xff]  }
 0x11c   :  { %2452 = vmatprep.subr.bf16.mxu0 %v3565_v29  ;;  %v3515_v23 = vld [vmem:[#allocation5 + $0x608] ss:$16 sps:$4 sm:$0xff]  }
 0x11d   :  { %1948 = vmatmul.mubr.bf16.vlgmr.msra.gmra.mrb[4].mxu1 %v3937_v9  ;;  %v3569_v9 = vld [vmem:[#allocation8 + $0x20] ss:$8 sps:$4 sm:$0xff]   ;;  %v3521_v29 = vld [vmem:[#allocation5 + $0x648] ss:$16 sps:$4 sm:$0xff]  }
 0x11e   :  { %1862 = vmatmul.mubr.bf16.vlgmr.msra.gmra.mrb[0].mxu0 %v3968_v26  ;;  %1959 = vmatpush1.bf16.msra.mxu1 %v3467_v24  ;;  %v3520_v24 = vld [vmem:[#allocation5 + $0x62c] ss:$16 sps:$4 sm:$0xff]  }
 0x11f   :  { %1990 = vmatprep.mubr.bf16.mxu1 %v3947_v38  ;;  %1960 = vmatprep.subr.bf16.mxu1 %v3472_v27  ;;  %v3572_v38 = vld [vmem:[#allocation8 + $0x30] ss:$8 sps:$4 sm:$0xff]   ;;  %v3518_v27 = vld [vmem:[#allocation5 + $0x628] ss:$16 sps:$4 sm:$0xff]  }
 0x120   :  { %2453 = vmatpush1.bf16.msra.mxu0 %v3563_v28  ;;  %v3523_v28 = vld [vmem:[#allocation5 + $0x64c] ss:$16 sps:$4 sm:$0xff]  }
 0x121   :  { %2454 = vmatprep.subr.bf16.mxu0 %v3568_v30  ;;  %v3524_v30 = vld [vmem:[#allocation5 + $0x668] ss:$16 sps:$4 sm:$0xff]  }
 0x122   :  { %1961 = vmatpush1.bf16.msra.mxu1 %v3470_v8  ;;  %v3526_v8 = vld [vmem:[#allocation5 + $0x66c] ss:$16 sps:$4 sm:$0xff]  }
 0x123   :  { %1962 = vmatprep.subr.bf16.mxu1 %v3475_v31  ;;  %v3529_v31 = vld [vmem:[#allocation5 + $0x68c] ss:$16 sps:$4 sm:$0xff]  }
 0x124   :  { %2455 = vmatpush1.bf16.msra.mxu0 %v3566_v21  ;;  %v3527_v21 = vld [vmem:[#allocation5 + $0x688] ss:$16 sps:$4 sm:$0xff]  }
 0x125   :  { %2456 = vmatprep.subr.bf16.mxu0 %v3571_v22  ;;  %v3532_v22 = vld [vmem:[#allocation5 + $0x6ac] ss:$16 sps:$4 sm:$0xff]  }
 0x126   :  { %1963 = vmatpush1.bf16.msra.mxu1 %v3473_v32  ;;  %v3535_v32 = vld [vmem:[#allocation5 + $0x6cc] ss:$16 sps:$4 sm:$0xff]  }
 0x127   :  { %1964 = vmatprep.subr.bf16.mxu1 %v3478_v33 }
 0x128   :  { %2457 = vmatpush1.bf16.msra.mxu0 %v3569_v9  ;;  %v3607_v9 = vld [vmem:[#allocation8 + $0xe4] ss:$8 sps:$4 sm:$0xff]  }
 0x129   :  { %2458 = vmatprep.subr.bf16.mxu0 %v3574_v36  ;;  %v3605_v36 = vld [vmem:[#allocation8 + $0xe0] ss:$8 sps:$4 sm:$0xff]  }
 0x12a   :  { %1965 = vmatpush1.bf16.msra.mxu1 %v3476_v34 }
 0x12b   :  { %1966 = vmatprep.subr.bf16.mxu1 %v3481_v35  ;;  %v3533_v35 = vld [vmem:[#allocation5 + $0x6c8] ss:$16 sps:$4 sm:$0xff]  }
 0x12c   :  { %2459 = vmatpush1.bf16.msra.mxu0 %v3572_v38 }
 0x12d   :  { %2460 = vmatprep.subr.bf16.mxu0 %v3577_v55  ;;  %v3538_v55 = vld [vmem:[#allocation5 + $0x6ec] ss:$16 sps:$4 sm:$0xff]  }
 0x12e   :  { %1967 = vmatpush1.bf16.msra.mxu1 %v3479_v37  ;;  %v3610_v37 = vld [vmem:[#allocation8 + $0xf4] ss:$8 sps:$4 sm:$0xff]  }
 0x12f   :  { %1968 = vmatprep.subr.bf16.mxu1 %v3484_v39  ;;  %v3536_v39 = vld [vmem:[#allocation5 + $0x6e8] ss:$16 sps:$4 sm:$0xff]  }
 0x130   :  { %2461 = vmatpush1.bf16.msra.mxu0 %v3575_v40  ;;  %v3608_v40 = vld [vmem:[#allocation8 + $0xf0] ss:$8 sps:$4 sm:$0xff]  }
 0x131   :  { %2462 = vmatprep.subr.bf16.mxu0 %v3580_v41  ;;  %v3541_v41 = vld [vmem:[#allocation5 + $0x70c] ss:$16 sps:$4 sm:$0xff]  }
 0x132   :  { %1969 = vmatpush1.bf16.msra.mxu1 %v3482_v42  ;;  %v3539_v42 = vld [vmem:[#allocation5 + $0x708] ss:$16 sps:$4 sm:$0xff]  }
 0x133   :  { %1970 = vmatprep.subr.bf16.mxu1 %v3487_v43  ;;  %v3544_v43 = vld [vmem:[#allocation5 + $0x72c] ss:$16 sps:$4 sm:$0xff]  }
 0x134   :  { %2463 = vmatpush1.bf16.msra.mxu0 %v3578_v44  ;;  %v3613_v44 = vld [vmem:[#allocation8 + $0x104] ss:$8 sps:$4 sm:$0xff]  }
 0x135   :  { %2464 = vmatprep.subr.bf16.mxu0 %v3583_v45  ;;  %v3542_v45 = vld [vmem:[#allocation5 + $0x728] ss:$16 sps:$4 sm:$0xff]  }
 0x136   :  { %1971 = vmatpush1.bf16.msra.mxu1 %v3485_v46  ;;  %v3547_v46 = vld [vmem:[#allocation5 + $0x74c] ss:$16 sps:$4 sm:$0xff]  }
 0x137   :  { %1972 = vmatprep.subr.bf16.mxu1 %v3490_v47  ;;  %v3545_v47 = vld [vmem:[#allocation5 + $0x748] ss:$16 sps:$4 sm:$0xff]  }
 0x138   :  { %2465 = vmatpush1.bf16.msra.mxu0 %v3581_v48  ;;  %v3550_v48 = vld [vmem:[#allocation5 + $0x76c] ss:$16 sps:$4 sm:$0xff]  }
 0x139   :  { %2466 = vmatprep.subr.bf16.mxu0 %v3586_v49  ;;  %v3548_v49 = vld [vmem:[#allocation5 + $0x768] ss:$16 sps:$4 sm:$0xff]  }
 0x13a   :  { %1973 = vmatpush1.bf16.msra.mxu1 %v3488_v50  ;;  %v3553_v50 = vld [vmem:[#allocation5 + $0x78c] ss:$16 sps:$4 sm:$0xff]  }
 0x13b   :  { %1974 = vmatprep.subr.bf16.mxu1 %v3493_v51  ;;  %v3551_v51 = vld [vmem:[#allocation5 + $0x788] ss:$16 sps:$4 sm:$0xff]  }
 0x13c   :  { %2467 = vmatpush1.bf16.msra.mxu0 %v3584_v52  ;;  %v3556_v52 = vld [vmem:[#allocation5 + $0x7ac] ss:$16 sps:$4 sm:$0xff]  }
 0x13d   :  { %2468 = vmatprep.subr.bf16.mxu0 %v3589_v53  ;;  %v3554_v53 = vld [vmem:[#allocation5 + $0x7a8] ss:$16 sps:$4 sm:$0xff]  }
 0x13e   :  { %1975 = vmatpush1.bf16.msra.mxu1 %v3491_v54  ;;  %v3559_v54 = vld [vmem:[#allocation5 + $0x7cc] ss:$16 sps:$4 sm:$0xff]  }
 0x13f   :  { %1976 = vmatprep.subr.bf16.mxu1 %v3496_v56  ;;  %v3557_v56 = vld [vmem:[#allocation5 + $0x7c8] ss:$16 sps:$4 sm:$0xff]  }
 0x140   :  { %2469 = vmatpush1.bf16.msra.mxu0 %v3587_v57  ;;  %v3562_v57 = vld [vmem:[#allocation5 + $0x7ec] ss:$16 sps:$4 sm:$0xff]  }
 0x141   :  { %2470 = vmatprep.subr.bf16.mxu0 %v3592_v58  ;;  %v3560_v58 = vld [vmem:[#allocation5 + $0x7e8] ss:$16 sps:$4 sm:$0xff]  }
 0x142   :  { %1977 = vmatpush1.bf16.msra.mxu1 %v3494_v59  ;;  %v360_v59 = vlaneseq }
 0x143   :  { %1978 = vmatprep.subr.bf16.mxu1 %v3499_v60 }
 0x144   :  { %2471 = vmatpush1.bf16.msra.mxu0 %v3590_v61  ;;  %v3976_v60 = vshrl.u32 %v360_v59, 7  ;;  %v3653_v59 = vld [vmem:[#allocation8 + $0x1e0] ss:$8 sps:$4 sm:$0xff]  }
 0x145   :  { %2472 = vmatprep.subr.bf16.mxu0 %v3595_v62  ;;  %v3979_v62 = vld [vmem:[#allocation7] sm:$0xf] }
 0x146   :  { %1979 = vmatpush1.bf16.msra.mxu1 %v3497_v63  ;;  %v362_v61 = vsub.s32 0, %v3976_v60  ;;  %v366_v63 = vsub.s32 1, %v3976_v60 }
 0x147   :  { %1980 = vmatprep.subr.bf16.mxu1 %v3502_v0 }
 0x148   :  { %2473 = vmatpush1.bf16.msra.mxu0 %v3593_v1  ;;  %v363_v0 = vrot.slane %v3979_v62, %v362_v61  ;;  %v367_v1 = vrot.slane %v3979_v62, %v366_v63 }
 0x149   :  { %2474 = vmatprep.subr.bf16.mxu0 %v3598_v2 }
 0x14a   :  { %1981 = vmatpush1.bf16.msra.mxu1 %v3500_v3 }
 0x14b   :  { %1982 = vmatprep.subr.bf16.mxu1 %v3505_v4 }
 0x14c   :  { %2475 = vmatpush1.bf16.msra.mxu0 %v3596_v5 }
 0x14d   :  { %2476 = vmatprep.subr.bf16.mxu0 %v3601_v6 }
 0x14e   :  { %1983 = vmatpush1.bf16.msra.mxu1 %v3503_v7 }
 0x14f   :  { %1984 = vmatprep.subr.bf16.mxu1 %v3508_v10 }
 0x150   :  { %2477 = vmatpush1.bf16.msra.mxu0 %v3599_v11 }
 0x151   :  { %2478 = vmatprep.subr.bf16.mxu0 %v3604_v12 }
 0x152   :  { %1985 = vmatpush1.bf16.msra.mxu1 %v3506_v13 }
 0x153   :  { %1986 = vmatprep.subr.bf16.mxu1 %v3511_v14 }
 0x154   :  { %2479 = vmatpush1.bf16.msra.mxu0 %v3602_v15 }
 0x155   :  { %2480 = vmatprep.subr.bf16.mxu0 %v3607_v9  ;;  %v3620_v9 = vld [vmem:[#allocation8 + $0x130] ss:$8 sps:$4 sm:$0xff]  }
 0x156   :  { %1987 = vmatpush1.bf16.msra.mxu1 %v3509_v17 }
 0x157   :  { %1988 = vmatprep.subr.bf16.mxu1 %v3514_v18 }
 0x158   :  { %2481 = vmatpush1.bf16.msra.mxu0 %v3605_v36  ;;  %v3667_v36 = vld [vmem:[#allocation10 + $0x60] sm:$0xff]  }
 0x159   :  { %2482 = vmatprep.subr.bf16.mxu0 %v3610_v37  ;;  %v3668_v37 = vld [vmem:[#allocation10 + $0x20] sm:$0xff]  }
 0x15a   :  { %1989 = vmatpush1.bf16.msra.mxu1 %v3512_v19 }
 0x15b   :  { %2001 = vmatprep.subr.bf16.mxu1 %v3517_v20 }
 0x15c   :  { %2483 = vmatpush1.bf16.msra.mxu0 %v3608_v40  ;;  %v3626_v40 = vld [vmem:[#allocation8 + $0x150] ss:$8 sps:$4 sm:$0xff]  }
 0x15d   :  { %1991 = vmatmul.mubr.bf16.vlgmr.msra.gmra.mrb[4].mxu1 %v3952_v16  ;;  %v3530_v16 = vld [vmem:[#allocation5 + $0x6a8] ss:$16 sps:$4 sm:$0xff]   ;;  %2495 = vmatprep.subr.bf16.mxu0 %v3613_v44  ;;  %v3632_v44 = vld [vmem:[#allocation8 + $0x170] ss:$8 sps:$4 sm:$0xff]  }
 0x15e   :  { %2002 = vmatpush1.bf16.msra.mxu1 %v3515_v23  ;;  %2033 = vmatprep.mubr.bf16.mxu1 %v3962_v25 }
 0x15f   :  { %2003 = vmatprep.subr.bf16.mxu1 %v3520_v24  ;;  %v3611_v24 = vld [vmem:[#allocation8 + $0x100] ss:$8 sps:$4 sm:$0xff]  }
 0x162   :  { %2004 = vmatpush1.bf16.msra.mxu1 %v3518_v27  ;;  %v3616_v27 = vld [vmem:[#allocation8 + $0x114] ss:$8 sps:$4 sm:$0xff]  }
 0x163   :  { %2005 = vmatprep.subr.bf16.mxu1 %v3523_v28  ;;  %v3659_v28 = vld [vmem:[#allocation10 + $0x40] sm:$0xff]  }
 0x166   :  { %2006 = vmatpush1.bf16.msra.mxu1 %v3521_v29  ;;  %v3660_v29 = vld [vmem:[#allocation10] sm:$0xff]  }
 0x167   :  { %2007 = vmatprep.subr.bf16.mxu1 %v3526_v8  ;;  %v3661_v8 = vld [vmem:[#allocation10 + $0x48] sm:$0xff]  }
 0x16a   :  { %2008 = vmatpush1.bf16.msra.mxu1 %v3524_v30  ;;  %v3614_v30 = vld [vmem:[#allocation8 + $0x110] ss:$8 sps:$4 sm:$0xff]  }
 0x16b   :  { %2009 = vmatprep.subr.bf16.mxu1 %v3529_v31  ;;  %v3619_v31 = vld [vmem:[#allocation8 + $0x124] ss:$8 sps:$4 sm:$0xff]  }
 0x16e   :  { %2010 = vmatpush1.bf16.msra.mxu1 %v3527_v21  ;;  %v3662_v21 = vld [vmem:[#allocation10 + $0x8] sm:$0xff]  }
 0x16f   :  { %2011 = vmatprep.subr.bf16.mxu1 %v3532_v22  ;;  %v3663_v22 = vld [vmem:[#allocation10 + $0x50] sm:$0xff]  }
 0x170   :  { %v1734_v33 = vpop.f32.mrb[0].mxu1 }
 0x171   :  { %v1736_v25 = vpop.f32.mrb[1].mxu1  ;;  %v1735_v2 = vadd.f32 %v1734_v33, %v363_v0  ;;  %v3664_v33 = vld [vmem:[#allocation10 + $0x10] sm:$0xff]  }
 0x172   :  { %v1738_v34 = vpop.f32.mrb[2].mxu1  ;;  %2012 = vmatpush1.bf16.msra.mxu1 %v3530_v16  ;;  %v1737_v3 = vadd.f32 %v1736_v25, %v367_v1  ;;  %v3617_v16 = vld [vmem:[#allocation8 + $0x120] ss:$8 sps:$4 sm:$0xff]   ;;  %v3665_v25 = vld [vmem:[#allocation10 + $0x58] sm:$0xff]  }
 0x173   :  { %v1740_v38 = vpop.f32.mrb[3].mxu1  ;;  %2013 = vmatprep.subr.bf16.mxu1 %v3535_v32  ;;  %v1739_v4 = vadd.f32 %v1738_v34, %v363_v0  ;;  %v3622_v32 = vld [vmem:[#allocation8 + $0x134] ss:$8 sps:$4 sm:$0xff]   ;;  %v3625_v34 = vld [vmem:[#allocation8 + $0x144] ss:$8 sps:$4 sm:$0xff]  }
 0x174   :  { %v1741_v7 = vadd.f32 %v1740_v38, %v367_v1  ;;  %v3623_v38 = vld [vmem:[#allocation8 + $0x140] ss:$8 sps:$4 sm:$0xff]   ;;  %v3658_v0 = vld [vmem:[#allocation8 + $0x1f4] ss:$8 sps:$4 sm:$0xff]   ;;  %v3656_v1 = vld [vmem:[#allocation8 + $0x1f0] ss:$8 sps:$4 sm:$0xff]  }
 0x176   :  { %2014 = vmatpush1.bf16.msra.mxu1 %v3533_v35  ;;  %v3666_v35 = vld [vmem:[#allocation10 + $0x18] sm:$0xff]  }
 0x177   :  { %2015 = vmatprep.subr.bf16.mxu1 %v3538_v55  ;;  %v3628_v55 = vld [vmem:[#allocation8 + $0x154] ss:$8 sps:$4 sm:$0xff]  }
 0x17a   :  { %2016 = vmatpush1.bf16.msra.mxu1 %v3536_v39  ;;  %v3669_v39 = vld [vmem:[#allocation10 + $0x68] sm:$0xff]  }
 0x17b   :  { %2017 = vmatprep.subr.bf16.mxu1 %v3541_v41  ;;  %v3631_v41 = vld [vmem:[#allocation8 + $0x164] ss:$8 sps:$4 sm:$0xff]  }
 0x17e   :  { %2018 = vmatpush1.bf16.msra.mxu1 %v3539_v42  ;;  %v3629_v42 = vld [vmem:[#allocation8 + $0x160] ss:$8 sps:$4 sm:$0xff]  }
 0x17f   :  { %2019 = vmatprep.subr.bf16.mxu1 %v3544_v43  ;;  %v3634_v43 = vld [vmem:[#allocation8 + $0x174] ss:$8 sps:$4 sm:$0xff]  }
 0x182   :  { %2020 = vmatpush1.bf16.msra.mxu1 %v3542_v45  ;;  %v3637_v45 = vld [vmem:[#allocation8 + $0x184] ss:$8 sps:$4 sm:$0xff]  }
 0x183   :  { %2021 = vmatprep.subr.bf16.mxu1 %v3547_v46  ;;  %v3635_v46 = vld [vmem:[#allocation8 + $0x180] ss:$8 sps:$4 sm:$0xff]  }
 0x186   :  { %2022 = vmatpush1.bf16.msra.mxu1 %v3545_v47  ;;  %v3640_v47 = vld [vmem:[#allocation8 + $0x194] ss:$8 sps:$4 sm:$0xff]  }
 0x187   :  { %2023 = vmatprep.subr.bf16.mxu1 %v3550_v48  ;;  %v3638_v48 = vld [vmem:[#allocation8 + $0x190] ss:$8 sps:$4 sm:$0xff]  }
 0x18a   :  { %2024 = vmatpush1.bf16.msra.mxu1 %v3548_v49  ;;  %v3643_v49 = vld [vmem:[#allocation8 + $0x1a4] ss:$8 sps:$4 sm:$0xff]  }
 0x18b   :  { %2025 = vmatprep.subr.bf16.mxu1 %v3553_v50  ;;  %v3641_v50 = vld [vmem:[#allocation8 + $0x1a0] ss:$8 sps:$4 sm:$0xff]  }
 0x18e   :  { %2026 = vmatpush1.bf16.msra.mxu1 %v3551_v51  ;;  %v3646_v51 = vld [vmem:[#allocation8 + $0x1b4] ss:$8 sps:$4 sm:$0xff]  }
 0x18f   :  { %2027 = vmatprep.subr.bf16.mxu1 %v3556_v52  ;;  %v3644_v52 = vld [vmem:[#allocation8 + $0x1b0] ss:$8 sps:$4 sm:$0xff]  }
 0x192   :  { %2028 = vmatpush1.bf16.msra.mxu1 %v3554_v53  ;;  %v3649_v53 = vld [vmem:[#allocation8 + $0x1c4] ss:$8 sps:$4 sm:$0xff]  }
 0x193   :  { %2029 = vmatprep.subr.bf16.mxu1 %v3559_v54  ;;  %v3647_v54 = vld [vmem:[#allocation8 + $0x1c0] ss:$8 sps:$4 sm:$0xff]  }
 0x196   :  { %2030 = vmatpush1.bf16.msra.mxu1 %v3557_v56  ;;  %v3652_v56 = vld [vmem:[#allocation8 + $0x1d4] ss:$8 sps:$4 sm:$0xff]  }
 0x197   :  { %2031 = vmatprep.subr.bf16.mxu1 %v3562_v57  ;;  %v3650_v57 = vld [vmem:[#allocation8 + $0x1d0] ss:$8 sps:$4 sm:$0xff]  }
 0x19a   :  { %2032 = vmatpush1.bf16.msra.mxu1 %v3560_v58  ;;  %v3655_v58 = vld [vmem:[#allocation8 + $0x1e4] ss:$8 sps:$4 sm:$0xff]  }
 0x19b   :  { %3103 = vmatprep.subr.bf16.mxu1 %v3659_v28  ;;  %v3673_v28 = vld [vmem:[#allocation10 + $0x78] sm:$0xff]  }
 0x19d   :  { %2034 = vmatmul.mubr.bf16.vlgmr.msra.gmra.mrb[4].mxu1 %v3968_v26 }
 0x19e   :  { %3104 = vmatpush3.bf16.msra.mxu1 %v3660_v29  ;;  %v3674_v29 = vld [vmem:[#allocation10 + $0x38] sm:$0xff]  }
 0x19f   :  { %3105 = vmatprep.subr.bf16.mxu1 %v3661_v8  ;;  %v2120_v8 = vld [vmem:[%s4021_s4] sm:$0x3] }
 0x1a2   :  { %3106 = vmatpush3.bf16.msra.mxu1 %v3662_v21 }
 0x1a3   :  { %3107 = vmatprep.subr.bf16.mxu1 %v3663_v22 }
 0x1a6   :  { %3108 = vmatpush3.bf16.msra.mxu1 %v3664_v33 }
 0x1a7   :  { %3109 = vmatprep.subr.bf16.mxu1 %v3665_v25 }
 0x1aa   :  { %3110 = vmatpush3.bf16.msra.mxu1 %v3666_v35 }
 0x1ab   :  { %3111 = vmatprep.subr.bf16.mxu1 %v3667_v36 }
 0x1ae   :  { %3112 = vmatpush3.bf16.msra.mxu1 %v3668_v37 }
 0x1af   :  { %3113 = vmatprep.subr.bf16.mxu1 %v3669_v39 }
 0x1f1   :  { %v1863_v26 = vpop.f32.mrb[0].mxu0 }
 0x1f2   :  { %v3126_v5 = vadd.f32 %v1863_v26, %v1735_v2  ;;  %v1865_v6 = vpop.f32.mrb[1].mxu0  ;;  %v370_v2 = vsub.s32 2, %v3976_v60 }
 0x1f3   :  { %v3128_v10 = vadd.f32 %v1865_v6, %v1737_v3  ;;  %v1867_v11 = vpop.f32.mrb[2].mxu0  ;;  %v374_v3 = vsub.s32 3, %v3976_v60 }
 0x1f4   :  { %v3130_v12 = vadd.f32 %v1867_v11, %v1739_v4  ;;  %v1869_v13 = vpop.f32.mrb[3].mxu0  ;;  %v2044_v15 = vmax.f32 %v3126_v5, 0.0  ;;  %v371_v26 = vrot.slane %v3979_v62, %v370_v2 }
 0x1f5   :  { %v3132_v14 = vadd.f32 %v1869_v13, %v1741_v7  ;;  %v2045_v18 = vmax.f32 %v3128_v10, 0.0  ;;  %v375_v4 = vrot.slane %v3979_v62, %v374_v3  ;;  %v3672_v62 = vld [vmem:[#allocation10 + $0x30] sm:$0xff]  }
 0x1f6   :  { %v2048_v17 = vmax.f32 %v3130_v12, 0.0 }
 0x1f7   :  { %v2049_v19 = vmax.f32 %v3132_v14, 0.0 }
 0x1f8   :  { %v2052_v20 = vpack.c.bf16 %v2048_v17, %v2044_v15 }
 0x1f9   :  { %v2053_v23 = vpack.c.bf16 %v2049_v19, %v2045_v18 }
 0x1fb   :  { %2484 = vmatprep.mubr.bf16.mxu0 %v2053_v23 }
 0x1fc   :  { %2485 = vmatmul.mubr.bf16.vlgmr.msra.gmra.mrb[4].mxu0 %v2052_v20 }
 0x1fd   :  { %2496 = vmatpush1.bf16.msra.mxu0 %v3611_v24  ;;  %v3670_v24 = vld [vmem:[#allocation10 + $0x28] sm:$0xff]  }
 0x1fe   :  { %2497 = vmatprep.subr.bf16.mxu0 %v3616_v27  ;;  %3114 = vmatpush3.bf16.msra.mxu1 %v3670_v24  ;;  %v3671_v27 = vld [vmem:[#allocation10 + $0x70] sm:$0xff]  }
 0x1ff   :  { %3115 = vmatprep.subr.bf16.mxu1 %v3671_v27 }
 0x201   :  { %2498 = vmatpush1.bf16.msra.mxu0 %v3614_v30  ;;  %v2125_v30 = vrot.slane %v2120_v8, %v362_v61 }
 0x202   :  { %2499 = vmatprep.subr.bf16.mxu0 %v3619_v31  ;;  %3116 = vmatpush3.bf16.msra.mxu1 %v3672_v62  ;;  %v2129_v31 = vrot.slane %v2120_v8, %v366_v63 }
 0x203   :  { %3117 = vmatprep.subr.bf16.mxu1 %v3673_v28 }
 0x205   :  { %2500 = vmatpush1.bf16.msra.mxu0 %v3617_v16 }
 0x206   :  { %2501 = vmatprep.subr.bf16.mxu0 %v3622_v32  ;;  %3118 = vmatpush3.bf16.msra.mxu1 %v3674_v29 }
 0x209   :  { %2502 = vmatpush1.bf16.msra.mxu0 %v3620_v9 }
 0x20a   :  { %2503 = vmatprep.subr.bf16.mxu0 %v3625_v34 }
 0x20d   :  { %2504 = vmatpush1.bf16.msra.mxu0 %v3623_v38 }
 0x20e   :  { %2505 = vmatprep.subr.bf16.mxu0 %v3628_v55 }
 0x211   :  { %2506 = vmatpush1.bf16.msra.mxu0 %v3626_v40 }
 0x212   :  { %2507 = vmatprep.subr.bf16.mxu0 %v3631_v41  ;;  %v3077_v41 = vld [vmem:[%s4023_s6] ss:$0 sm:$0xff] }
 0x215   :  { %2508 = vmatpush1.bf16.msra.mxu0 %v3629_v42 }
 0x216   :  { %2509 = vmatprep.subr.bf16.mxu0 %v3634_v43 }
 0x219   :  { %2510 = vmatpush1.bf16.msra.mxu0 %v3632_v44 }
 0x21a   :  { %2511 = vmatprep.subr.bf16.mxu0 %v3637_v45 }
 0x21d   :  { %2512 = vmatpush1.bf16.msra.mxu0 %v3635_v46 }
 0x21e   :  { %2513 = vmatprep.subr.bf16.mxu0 %v3640_v47 }
 0x221   :  { %2514 = vmatpush1.bf16.msra.mxu0 %v3638_v48 }
 0x222   :  { %2515 = vmatprep.subr.bf16.mxu0 %v3643_v49 }
 0x225   :  { %2516 = vmatpush1.bf16.msra.mxu0 %v3641_v50 }
 0x226   :  { %2517 = vmatprep.subr.bf16.mxu0 %v3646_v51 }
 0x229   :  { %2518 = vmatpush1.bf16.msra.mxu0 %v3644_v52 }
 0x22a   :  { %2519 = vmatprep.subr.bf16.mxu0 %v3649_v53 }
 0x22d   :  { %2520 = vmatpush1.bf16.msra.mxu0 %v3647_v54 }
 0x22e   :  { %2521 = vmatprep.subr.bf16.mxu0 %v3652_v56 }
 0x231   :  { %2522 = vmatpush1.bf16.msra.mxu0 %v3650_v57 }
 0x232   :  { %2523 = vmatprep.subr.bf16.mxu0 %v3655_v58 }
 0x235   :  { %2524 = vmatpush1.bf16.msra.mxu0 %v3653_v59 }
 0x236   :  { %2525 = vmatprep.subr.bf16.mxu0 %v3658_v0 }
 0x239   :  { %2526 = vmatpush1.bf16.msra.mxu0 %v3656_v1 }
 0x270   :  { %v2035_v5 = vpop.f32.mrb[4].mxu1 }
 0x271   :  { %v3133_v6 = vadd.f32 %v2035_v5, %v371_v26  ;;  %v2037_v7 = vpop.f32.mrb[5].mxu1 }
 0x272   :  { %v3134_v10 = vadd.f32 %v2037_v7, %v375_v4  ;;  %v2039_v11 = vpop.f32.mrb[6].mxu1 }
 0x273   :  { %v3135_v12 = vadd.f32 %v2039_v11, %v371_v26  ;;  %v2041_v13 = vpop.f32.mrb[7].mxu1  ;;  %v2046_v15 = vmax.f32 %v3133_v6, 0.0 }
 0x274   :  { %v3136_v14 = vadd.f32 %v2041_v13, %v375_v4  ;;  %v2047_v18 = vmax.f32 %v3134_v10, 0.0 }
 0x275   :  { %v2050_v17 = vmax.f32 %v3135_v12, 0.0 }
 0x276   :  { %v2051_v19 = vmax.f32 %v3136_v14, 0.0 }
 0x277   :  { %v2054_v20 = vpack.c.bf16 %v2050_v17, %v2046_v15 }
 0x278   :  { %v2055_v23 = vpack.c.bf16 %v2051_v19, %v2047_v18 }
 0x27a   :  { %2527 = vmatprep.mubr.bf16.mxu0 %v2055_v23 }
 0x27b   :  { %2528 = vmatmul.mubr.bf16.vlgmr.msra.gmra.mrb[4].mxu0 %v2054_v20 }
 0x34e   :  { %v2529_v21 = vpop.f32.mrb[4].mxu0 }
 0x34f   :  { %v3137_v22 = vadd.f32 %v2529_v21, %v2125_v30  ;;  %v2531_v16 = vpop.f32.mrb[5].mxu0 }
 0x350   :  { %v3138_v32 = vadd.f32 %v2531_v16, %v2129_v31  ;;  %v2533_v33 = vpop.f32.mrb[6].mxu0 }
 0x351   :  { %v3139_v25 = vadd.f32 %v2533_v33, %v2125_v30  ;;  %v2535_v9 = vpop.f32.mrb[7].mxu0  ;;  %v2538_v35 = vmax.f32 %v3137_v22, 0.0 }
 0x352   :  { %v3140_v34 = vadd.f32 %v2535_v9, %v2129_v31  ;;  %v2539_v38 = vmax.f32 %v3138_v32, 0.0 }
 0x353   :  { %v2540_v36 = vmax.f32 %v3139_v25, 0.0 }
 0x354   :  { %v2541_v55 = vmax.f32 %v3140_v34, 0.0 }
 0x355   :  { %v2542_v37 = vpack.c.bf16 %v2540_v36, %v2538_v35 }
 0x356   :  { %v2543_v39 = vpack.c.bf16 %v2541_v55, %v2539_v38 }
 0x358   :  { %2711 = vmatprep.mubr.bf16.mxu1 %v2543_v39 }
 0x359   :  { %2712 = vmatmul.mubr.bf16.vlgmr.msra.gmra.mrb[8].mxu1 %v2542_v37 }
 0x42c   :  { %v3119_v61 = vpop.f32.mrb[8].mxu1 }
 0x42d   :  { %v3120_v40 = vpop.f32.mrb[9].mxu1 }
 0x42e   :  { %v3121_v60 = vadd.f32 %v3120_v40, %v3119_v61  ;;  %v3122_v63 = vpop.f32.mrb[10].mxu1 }
 0x42f   :  { %v3123_v42 = vpop.f32.mrb[11].mxu1 }
 0x430   :  { %v3124_v43 = vadd.f32 %v3123_v42, %v3122_v63  ;;  %v2714_v44 = vadd.f32 %v3121_v60, %v3077_v41 }
 0x432   :  { %v2717_v45 = vadd.f32 %v3124_v43, %v3077_v41 }
 0x434   :  { %v3101_v46 = vpack.c.bf16 %v2717_v45, %v2714_v44 }
 0x436   :  { %3102 = vst [vmem:[#allocation11] sm:$0xff] %v3101_v46  }
 0x437   :  { %3796 = shalt.err (!%p3793_p2)
}
 0x438   :  { %s3797_s6 = scalar_lea.hbm %s4024_s7, 128 }
 0x439   :  { %p3798_p3 = scmp.ne.s32.totalorder %s4024_s7, %s3797_s6  ;;  %p3801_p4 = scmp.lt.u32.totalorder %s3797_s6, %s4024_s7 }
 0x43b   :  { %p3803_p5 = pnand %p3801_p4, %p3798_p3 }
 0x43d   :  { %3806 = shalt.err (!%p3803_p5)
}
 0x43e   :  { %2741 = dma.vmem_to_hbm [thread:$0]  %s2736_s20, 128, %s4024_s7, [#allocation4], %s3826_s2, %s3826_s2, %s3827_s3  }
 0x43f   :  { %3813 = dma.done.wait [#allocation4], 128  }
 0x440   :  { %3814 = vsyncadd [#allocation4], 4294967168 }
 0x441   :  { %2745 = vsyncpa [#allocation3], 1 }
 0x442   :  { %2746 = vsyncpa [#allocation6], 1 }
 0x443   :  { %2747 = vsyncpa [#allocation9], 1 }
 0x444   :  { %2748 = vsyncpa [#allocation4], 1 }

</bundles_post_ra>
